<compile_context>
chip_gen: v7x
topology: tpu7x:2x2x1
jax: 0.10.0
libtpu: 0.0.40
codegen_flags: <defaults>
</compile_context>

<pallas_src>
import jax
import jax.numpy as jnp
from jax.experimental import pallas as pl
from jax.experimental.pallas import tpu as pltpu


def _round_up(x, m):
    return ((x + m - 1) // m) * m


def _choose_tiles(Td, Te, H, e_budget_bytes=2 * 1024 * 1024, elt_bytes=4):
    """Pick (Td_tile, Te_tile, Td_pad, Te_pad).

    Te_tile: multiple of 128 (lane-dense output), capped at 512.
    Td_tile: multiple of 8, sized so the (Td_tile, Te_tile, H) tanh tile
             stays within ~e_budget_bytes (fits VMEM/vregs on v5e/v6e/v7x).
    """
    Te_pad = _round_up(Te, 128)
    Te_tile = min(Te_pad, 512)
    Te_pad = _round_up(Te_pad, Te_tile)

    max_td = max(8, (e_budget_bytes // max(Te_tile * H * elt_bytes, 1)) // 8 * 8)
    Td_pad = _round_up(Td, 8)
    Td_tile = max(8, min(Td_pad, max_td, 256) // 8 * 8)
    Td_pad = _round_up(Td_pad, Td_tile)
    return Td_tile, Te_tile, Td_pad, Te_pad


def _score_kernel(q_ref, k_ref, wo_ref, out_ref):
    # q_ref: (1, Td_tile, H)   k_ref: (1, Te_tile, H)
    # wo_ref: (1, H) f32       out_ref: (1, Td_tile, Te_tile) f32
    q = q_ref[0]                                      # (Td_tile, H)
    k = k_ref[0]                                      # (Te_tile, H)
    wo = wo_ref[0]                                    # (H,)

    # Broadcast-add + tanh in compute dtype (EUP), bounded-size tile.
    e = jnp.tanh(q[:, None, :] + k[None, :, :])       # (Td_tile, Te_tile, H)

    # wo-weighted reduction over H: VPU mul + XLU lane-reduce, accumulate f32.
    scores = jnp.sum(e.astype(jnp.float32) * wo[None, None, :], axis=-1)
    out_ref[0] = scores.astype(out_ref.dtype)


def mlp_attention(decoder_input, encoder_input, wq, bq, wc, wo,
                  compute_dtype=jnp.float32):
    """decoder_input: [B, Td, Dd]  encoder_input: [B, Te, De]
       wq: [Dd, H]  bq: [H]  wc: [De, H]  wo: [H]
       returns scores: [B, Td, Te] (float32)"""
    B, Td, Dd = decoder_input.shape
    _, Te, De = encoder_input.shape
    H = wq.shape[1]

    # Hoisted linears (f32-accumulated) — tiny GEMMs left to XLA.
    q = jnp.einsum("btd,dh->bth", decoder_input, wq,
                   preferred_element_type=jnp.float32) + bq      # [B, Td, H]
    k = jnp.einsum("bsd,dh->bsh", encoder_input, wc,
                   preferred_element_type=jnp.float32)           # [B, Te, H]

    Td_tile, Te_tile, Td_pad, Te_pad = _choose_tiles(Td, Te, H)

    if Td_pad != Td:
        q = jnp.pad(q, ((0, 0), (0, Td_pad - Td), (0, 0)))
    if Te_pad != Te:
        k = jnp.pad(k, ((0, 0), (0, Te_pad - Te), (0, 0)))

    q = q.astype(compute_dtype)
    k = k.astype(compute_dtype)
    wo2 = wo.reshape(1, H).astype(jnp.float32)

    grid = (B, Td_pad // Td_tile, Te_pad // Te_tile)

    grid_spec = pltpu.PrefetchScalarGridSpec(
        num_scalar_prefetch=0,
        grid=grid,
        in_specs=[
            pl.BlockSpec((1, Td_tile, H), lambda b, i, j: (b, i, 0)),
            pl.BlockSpec((1, Te_tile, H), lambda b, i, j: (b, j, 0)),
            pl.BlockSpec((1, H), lambda b, i, j: (0, 0)),
        ],
        out_specs=pl.BlockSpec((1, Td_tile, Te_tile), lambda b, i, j: (b, i, j)),
    )

    scores_pad = pl.pallas_call(
        _score_kernel,
        out_shape=jax.ShapeDtypeStruct((B, Td_pad, Te_pad), jnp.float32),
        grid_spec=grid_spec,
        compiler_params=pltpu.CompilerParams(
            # Every output block is written exactly once -> all axes parallel
            # (lets v7x megacore shard over B and Td/Te tiles).
            dimension_semantics=("parallel", "parallel", "parallel"),
            # Explicit VMEM budget that fits v7x's 64 MiB as well as v5e/v6e.
            vmem_limit_bytes=48 * 1024 * 1024,
        ),
    )(q, k, wo2)

    return scores_pad[:, :Td, :Te]


def mlp_attention_ref(decoder_input, encoder_input, wq, bq, wc, wo):
    q = jnp.einsum("btd,dh->bth", decoder_input, wq) + bq          # [B,Td,H]
    k = jnp.einsum("bsd,dh->bsh", encoder_input, wc)               # [B,Te,H]
    e = jnp.tanh(q[:, :, None, :] + k[:, None, :, :])              # [B,Td,Te,H]
    return jnp.einsum("btsh,h->bts", e, wo)                        # [B,Td,Te]


if __name__ == "__main__":
    # Small deterministic shapes consistent with the module's forward contract.
    B, Td, Te = 2, 8, 16
    decoder_hidden_size, encoder_hidden_size, attention_hidden_size = 32, 48, 32

    key = jax.random.PRNGKey(0)
    k_dec, k_enc, k_wq, k_bq, k_wc, k_wo = jax.random.split(key, 6)

    decoder_input = jax.random.normal(k_dec, (B, Td, decoder_hidden_size), jnp.float32)
    encoder_input = jax.random.normal(k_enc, (B, Te, encoder_hidden_size), jnp.float32)

    # Parameters stored pre-transposed as (in_features, out_features).
    wq = 0.1 * jax.random.normal(k_wq, (decoder_hidden_size, attention_hidden_size), jnp.float32)
    bq = 0.1 * jax.random.normal(k_bq, (attention_hidden_size,), jnp.float32)
    wc = 0.1 * jax.random.normal(k_wc, (encoder_hidden_size, attention_hidden_size), jnp.float32)
    wo = 0.1 * jax.random.normal(k_wo, (attention_hidden_size,), jnp.float32)

    # f32 compute path (pass compute_dtype=jnp.bfloat16 on v6e/v7x for speed,
    # with a looser tolerance).
    scores = mlp_attention(decoder_input, encoder_input, wq, bq, wc, wo)
    scores = jax.block_until_ready(scores)

    ref = mlp_attention_ref(decoder_input, encoder_input, wq, bq, wc, wo)
    assert scores.shape == (B, Td, Te)
    assert jnp.allclose(scores, ref, atol=1e-5, rtol=1e-5), "mismatch vs reference"

    print("KERNEL_OK")
</pallas_src>

<mosaic_0001>
module attributes {stable_mosaic.version = 11 : i64} {
  func.func @_score_kernel(%arg0: i32, %arg1: i32, %arg2: i32, %arg3: memref<1x8x32xf32, #tpu.memory_space<vmem>>, %arg4: memref<1x128x32xf32, #tpu.memory_space<vmem>>, %arg5: memref<1x32xf32, #tpu.memory_space<vmem>>, %arg6: memref<1x8x128xf32, #tpu.memory_space<vmem>>) attributes {dimension_semantics = [#tpu.dimension_semantics<parallel>, #tpu.dimension_semantics<parallel>, #tpu.dimension_semantics<parallel>], iteration_bounds = array<i64: 2, 1, 1>, scalar_prefetch = 0 : i64, scratch_operands = 0 : i64, tpu.core_type = #tpu.core_type<tc>, window_params = [{transform_indices = @transform_0, window_bounds = array<i64: 1, 8, 32>}, {transform_indices = @transform_1, window_bounds = array<i64: 1, 128, 32>}, {pipeline_mode = #tpu.pipeline_mode<synchronous>, transform_indices = @transform_2, window_bounds = array<i64: 1, 32>}, {transform_indices = @transform_3, window_bounds = array<i64: 1, 8, 128>}]} {
    %c0 = arith.constant 0 : index
    %c0_0 = arith.constant 0 : index
    %c0_1 = arith.constant 0 : index
    %0 = vector.load %arg3[%c0, %c0_0, %c0_1] : memref<1x8x32xf32, #tpu.memory_space<vmem>>, vector<1x8x32xf32>
    %1 = vector.shape_cast %0 : vector<1x8x32xf32> to vector<8x32xf32>
    %c0_2 = arith.constant 0 : index
    %c0_3 = arith.constant 0 : index
    %c0_4 = arith.constant 0 : index
    %2 = vector.load %arg4[%c0_2, %c0_3, %c0_4] : memref<1x128x32xf32, #tpu.memory_space<vmem>>, vector<1x128x32xf32>
    %3 = vector.shape_cast %2 : vector<1x128x32xf32> to vector<128x32xf32>
    %c0_5 = arith.constant 0 : index
    %c0_6 = arith.constant 0 : index
    %4 = vector.load %arg5[%c0_5, %c0_6] : memref<1x32xf32, #tpu.memory_space<vmem>>, vector<1x32xf32>
    %5 = vector.shape_cast %4 : vector<1x32xf32> to vector<32xf32>
    %6 = vector.shape_cast %1 : vector<8x32xf32> to vector<8x1x32xf32>
    %7 = vector.shape_cast %3 : vector<128x32xf32> to vector<1x128x32xf32>
    %8 = vector.broadcast %6 : vector<8x1x32xf32> to vector<8x128x32xf32>
    %9 = vector.broadcast %7 : vector<1x128x32xf32> to vector<8x128x32xf32>
    %10 = arith.addf %8, %9 : vector<8x128x32xf32>
    %11 = math.tanh %10 : vector<8x128x32xf32>
    %12 = vector.shape_cast %5 : vector<32xf32> to vector<1x1x32xf32>
    %13 = vector.broadcast %12 : vector<1x1x32xf32> to vector<8x128x32xf32>
    %14 = arith.mulf %11, %13 : vector<8x128x32xf32>
    %cst = arith.constant dense<0.000000e+00> : vector<8x128xf32>
    %15 = vector.multi_reduction <add>, %14, %cst [2] : vector<8x128x32xf32> to vector<8x128xf32>
    %c0_7 = arith.constant 0 : index
    %c0_8 = arith.constant 0 : index
    %c0_9 = arith.constant 0 : index
    %16 = vector.load %arg6[%c0_7, %c0_8, %c0_9] : memref<1x8x128xf32, #tpu.memory_space<vmem>>, vector<1x8x128xf32>
    %17 = vector.shape_cast %16 : vector<1x8x128xf32> to vector<8x128xf32>
    %18 = vector.shape_cast %15 : vector<8x128xf32> to vector<1x8x128xf32>
    tpu.vector_store %arg6[%c0_7, %c0_8, %c0_9], %18 {strides = array<i32>} : memref<1x8x128xf32, #tpu.memory_space<vmem>>, vector<1x8x128xf32>,
    return
  }
  func.func @transform_0(%arg0: i32, %arg1: i32, %arg2: i32) -> (i32, i32, i32) {
    %c0_i32 = arith.constant 0 : i32
    %c0_i32_0 = arith.constant 0 : i32
    return %arg0, %arg1, %c0_i32 : i32, i32, i32
  }
  func.func @transform_1(%arg0: i32, %arg1: i32, %arg2: i32) -> (i32, i32, i32) {
    %c0_i32 = arith.constant 0 : i32
    %c0_i32_0 = arith.constant 0 : i32
    return %arg0, %arg2, %c0_i32 : i32, i32, i32
  }
  func.func @transform_2(%arg0: i32, %arg1: i32, %arg2: i32) -> (i32, i32) {
    %c0_i32 = arith.constant 0 : i32
    %c0_i32_0 = arith.constant 0 : i32
    %c0_i32_1 = arith.constant 0 : i32
    return %c0_i32, %c0_i32_0 : i32, i32
  }
  func.func @transform_3(%arg0: i32, %arg1: i32, %arg2: i32) -> (i32, i32, i32) {
    %c0_i32 = arith.constant 0 : i32
    return %arg0, %arg1, %arg2 : i32, i32, i32
  }
}

</mosaic_0001>

<bundles_post_ra>
// kernel: tpu_custom_call.1
= control target key start
LH: loop header
LB: loop body
LE: loop exit
PB: predicated region body
PF: predicated region fallthrough
CT: control target
= control target key end

     0   :  { %8 = vsyncpa [#allocation3], 0  ;;  %s3583_s0 = inlined_call_operand.vmem [shape: f32[2,8,32], index: 0, kind: input, shape index: {}]   ;;  %s3584_s1 = inlined_call_operand.vmem [shape: f32[2,128,32], index: 1, kind: input, shape index: {}]   ;;  %s3585_s2 = inlined_call_operand.vmem [shape: f32[1,32], index: 2, kind: input, shape index: {}]   ;;  %s3586_s3 = inlined_call_operand.hbm [shape: f32[2,8,128], index: 3, kind: output, shape index: {}]  }
   0x1   :  { %10 = vsyncpa [#allocation3 + $0x1], 0  ;;  %s2483_s12 = smov 0   ;;  %s2485_s13 = smov 0  }
   0x2   :  { %s2487_s14 = smov 0   ;;  %s2489_s15 = smov 0  }
   0x3   :  { %s2491_s16 = smov 0   ;;  %s2493_s17 = smov 0  }
   0x4 LB: > { %s2036_s18 = sadd.s32 4294967295, %s2459_s17   ;;  %s2037_s19 = sadd.s32 4294967294, %s2459_s17   ;;  %s2459_s17 = sphi %s2493_s17, %s16_s17   ;;  %s2455_s16 = sphi %s2491_s16, %s3599_s16   ;;  %s2451_s15 = sphi %s2489_s15, %s3598_s15   ;;  %s2447_s14 = sphi %s2487_s14, %s3597_s14   ;;  %s2443_s13 = sphi %s2485_s13, %s3596_s13   ;;  %s2439_s12 = sphi %s2483_s12, %s3595_s12  }
   0x5   : > { %s35_s20 = sadd.s32 1, %s2455_s16  ;;  %s123_s21 = sadd.s32 1, %s2447_s14 }
   0x6   : > { %p37_p0 = scmp.ge.s32.totalorder %s35_s20, 2  ;;  %p133_p1 = scmp.ne.s32.totalorder %s2447_s14, %s2443_s13 }
   0x7   : > { %p134_p2 = scmp.eq.s32.totalorder %s2036_s18, 1  ;;  %p139_p3 = scmp.ne.s32.totalorder %s2443_s13, %s2439_s12 }
   0x8   : > { %s3601_s20 = smov (%p37_p0, %s35_s20), 0  ;;  %p140_p5 = scmp.eq.s32.totalorder %s2037_s19, 1 }
   0x9   : > { %p2523_p4 = por %p134_p2, %p133_p1  ;;  %s116_s23 = ssub.s32 %s2455_s16, %s3601_s20 }
   0xa   : > { %p2040_p6 = scmp.ge.s32.totalorder %s2459_s17, 1  ;;  %p121_p7 = scmp.eq.s32.totalorder %s116_s23, 0 }
   0xb   : > { %p2530_p8 = por %p140_p5, %p139_p3  ;;  %p184_p9 = scmp.lt.s32.totalorder %s2459_s17, 3 }
   0xc   : > { %s2536_s25 = scalar_select %p121_p7, %s2447_s14, %s123_s21  }
   0xd   : > { %p185_p10 = pnand %p2040_p6, %p184_p9 }
   0xe   : > { %p219_p11 = scmp.lt.s32.totalorder (!%p185_p10), %s2451_s15, 1  ;;  %v259_v0 = vlaneseq (!%p185_p10)  ;;  %v2461_v1 = vmov (!%p185_p10), 1966171168   ;;  %v2636_v43 = vld [vmem:[%s3585_s2] ss:$0 sm:$0xff] (!%p185_p10)  ;;  %vm734_vm0 = vcmask (!%p185_p10), 261120  }
   0xf   : > { %188 = sbr.rel (%p185_p10) target bundleno = 463 (0x1cf), region = 32  ;;  %v257_v2 = vunpack.c.l.s4 (!%p185_p10), %v2461_v1  ;;  %vm1258_vm1 = vcmask (!%p185_p10), 130112   ;;  %vm1265_vm2 = vcmask (!%p185_p10), 195712   ;;  %vm1272_vm3 = vcmask (!%p185_p10), 261312   ;;  %s216_s18 = sand.u32 (!%p185_p10), 1, %s2443_s13  }
  0x10   : > { %v2541_v3 = vshrl.u32 (!%p185_p10), %v259_v0, 7  ;;  %vm1279_vm4 = vcmask (!%p185_p10), 326912   ;;  %vm1286_vm5 = vcmask (!%p185_p10), 392512   ;;  %vm1293_vm6 = vcmask (!%p185_p10), 458112   ;;  %s2041_s19 = sshll.u32 (!%p185_p10), %s216_s18, 3  ;;  %s2047_s21 = sshll.u32 (!%p185_p10), %s2451_s15, 7 }
  0x11   : > { %v258_v4 = vunpack.c.0.s8 (!%p185_p10), %v257_v2  ;;  %vm1300_vm7 = vcmask (!%p185_p10), 523712   ;;  %vm1307_vm8 = vcmask (!%p185_p10), 589312   ;;  %vm1314_vm9 = vcmask (!%p185_p10), 654912   ;;  %s218_s23 = scalar_lea.vmem (!%p185_p10), [#allocation2], %s2041_s19  ;;  %s3536_s29 = scalar_lea.hbm (!%p185_p10), %s3586_s3, %s2047_s21 }
  0x12   : > { %v2556_v8 = vsub.s32 (!%p185_p10), 0, %v2541_v3  ;;  %vm1321_vm10 = vcmask (!%p185_p10), 720512   ;;  %vm1328_vm11 = vcmask (!%p185_p10), 786112   ;;  %vm3587_vm12 = vcmask (!%p185_p10), 851712  }
  0x13   : > { %v2547_v5 = vsub.s32 (!%p185_p10), %v258_v4, %v2541_v3  ;;  %vm1342_vm13 = vcmask (!%p185_p10), 917312   ;;  %vm1349_vm14 = vcmask (!%p185_p10), 982912   ;;  %vm1356_vm15 = vcmask (!%p185_p10), 1048512  }
  0x16   : > { %s220_s26 = scalar_select %p219_p11, %s2451_s15, 1 }
  0x17   : > { %s1928_s15 = scalar_lea.sflag [#allocation3], %s216_s18 }
  0x18   : > { %s2042_s27 = sshll.u32 %s220_s26, 3  ;;  %s2050_s28 = sshll.u32 %s220_s26, 7 }
  0x19   : > { %s225_s4 = scalar_lea.vmem %s3583_s0, %s2042_s27  ;;  %s2552_s7 = scalar_lea.vmem %s3584_s1, %s2050_s28 }
  0x1a   : > { %v236_v6 = vld [vmem:[%s225_s4] sm:$0xff]  ;;  %v2563_v12 = vld [vmem:[%s2552_s7 + $0x10] sm:$0xff]  ;;  %v2577_v20 = vld [vmem:[%s2552_s7 + $0x18] sm:$0xff]  ;;  %s1943_s26 = sshll.u32 %s218_s23, 4  ;;  %s2462_s4 = smov [#allocation2]   ;;  %s3538_s26 = int_to_ptr.vmem [resolvable:$true] %s1943_s26 }
  0x1b   : > { %v262_v7 = vrot.slane %v236_v6, %v2547_v5  ;;  %v255_v9 = vcombine.high %v236_v6, %v236_v6  ;;  %v2571_v16 = vld [vmem:[%s2552_s7] sm:$0xff]  ;;  %v2580_v21 = vld [vmem:[%s2552_s7 + $0x8] sm:$0xff]  ;;  %v2597_v28 = vld [vmem:[%s2552_s7 + $0x38] sm:$0xff]  ;;  %s2381_s30 = scalar_lea.vmem %s3538_s26, 128  ;;  %s2385_s5 = sshll.u32 %s2462_s4, 4  ;;  %s2386_s5 = int_to_ptr.vmem [resolvable:$false] %s2385_s5 }
  0x1c   : > { %v2588_v24 = vld [vmem:[%s2552_s7 + $0x28] sm:$0xff]  ;;  %v2591_v25 = vld [vmem:[%s2552_s7 + $0x20] sm:$0xff]  ;;  %v2607_v32 = vld [vmem:[%s2552_s7 + $0x30] sm:$0xff]  ;;  %p2382_p12 = scmp.ne.s32.totalorder %s3538_s26, %s2381_s30  ;;  %s2387_s6 = scalar_lea.vmem %s2386_s5, 256 }
  0x1d   : > { %v2559_v10 = vrot.slane %v262_v7, %v2547_v5  ;;  %v269_v11 = vrot.slane %v255_v9, %v2547_v5  ;;  %v2619_v37 = vld [vmem:[%s2552_s7 + $0x48] sm:$0xff]  ;;  %v2624_v39 = vld [vmem:[%s2552_s7 + $0x40] sm:$0xff]  ;;  %v2631_v42 = vld [vmem:[%s2552_s7 + $0x58] sm:$0xff]  ;;  %v270_v45 = vcombine.high %v262_v7, %v262_v7  ;;  %p2388_p1 = scmp.lt.s32.totalorder %s3538_s26, %s2386_s5  ;;  %p2389_p2 = scmp.lt.s32.totalorder %s2387_s6, %s2381_s30 }
  0x1e   : > { %v2639_v44 = vld [vmem:[%s2552_s7 + $0x50] sm:$0xff]  ;;  %v2647_v51 = vld [vmem:[%s2552_s7 + $0x68] sm:$0xff]  ;;  %v2651_v53 = vld [vmem:[%s2552_s7 + $0x60] sm:$0xff]  ;;  %p2383_p13 = pnand %p2382_p12, %p2523_p4 }
  0x1f   : > { %v2567_v13 = vrot.slane %v2559_v10, %v2556_v8  ;;  %v271_v14 = vcombine.high %v269_v11, %v269_v11  ;;  %v285_v15 = vrot.slane %v269_v11, %v2547_v5  ;;  %v2655_v56 = vrot.slane %v270_v45, %v2547_v5  ;;  %v2665_v1 = vld [vmem:[%s2552_s7 + $0x78] sm:$0xff]  ;;  %v2670_v6 = vld [vmem:[%s2552_s7 + $0x70] sm:$0xff]  ;;  %p2390_p3 = por %p2389_p2, %p2388_p1 }
  0x20   : > { %p2384_p0 = pneg %p2383_p13 }
  0x21   : > { %v346_v17 = vadd.f32 %v2567_v13, %v2563_v12  ;;  %v299_v18 = vrot.slane %v271_v14, %v2547_v5  ;;  %v301_v19 = vcombine.high %v285_v15, %v285_v15  ;;  %v2583_v22 = vrot.slane %v285_v15, %v2556_v8 }
  0x22   : > { %v344_v23 = vadd.f32 %v2567_v13, %v2571_v16  ;;  %v347_v30 = vadd.f32 %v2567_v13, %v2577_v20  ;;  %v345_v31 = vadd.f32 %v2567_v13, %v2580_v21  ;;  %v349_v34 = vadd.f32 %v2567_v13, %v2588_v24  ;;  %p2391_p5 = pnand %p2390_p3, %p2384_p0 }
  0x23   : > { %2108 = vtanh.f32 %v346_v17  ;;  %v303_v26 = vcombine.high %v299_v18, %v299_v18  ;;  %v2594_v27 = vrot.slane %v299_v18, %v2556_v8  ;;  %v2600_v29 = vrot.slane %v301_v19, %v2556_v8 }
  0x24   : > { %2110 = vtanh.f32 %v344_v23  ;;  %v348_v35 = vadd.f32 %v2567_v13, %v2591_v25  ;;  %v351_v36 = vadd.f32 %v2567_v13, %v2597_v28  ;;  %v350_v38 = vadd.f32 %v2567_v13, %v2607_v32 }
  0x25   : > { %v2610_v33 = vrot.slane %v303_v26, %v2556_v8  ;;  %2112 = vtanh.f32 %v347_v30  ;;  %v353_v40 = vadd.f32 %v2567_v13, %v2619_v37  ;;  %v352_v41 = vadd.f32 %v2567_v13, %v2624_v39 }
  0x26   : > { %2114 = vtanh.f32 %v345_v31  ;;  %v355_v47 = vadd.f32 %v2567_v13, %v2631_v42  ;;  %v354_v50 = vadd.f32 %v2567_v13, %v2639_v44  ;;  %v357_v60 = vadd.f32 %v2567_v13, %v2647_v51 }
  0x27   : > { %2116 = vtanh.f32 %v349_v34  ;;  %v356_v63 = vadd.f32 %v2567_v13, %v2651_v53  ;;  %v2676_v15 = vrot.slane %v2655_v56, %v2556_v8  ;;  %v359_v17 = vadd.f32 %v2567_v13, %v2665_v1 }
  0x28   : > { %2118 = vtanh.f32 %v348_v35  ;;  %v358_v23 = vadd.f32 %v2567_v13, %v2670_v6 }
  0x29   : > { %2120 = vtanh.f32 %v351_v36  ;;  %v361_v35 = vadd.f32 %v2676_v15, %v2580_v21  ;;  %v360_v13 = vadd.f32 %v2676_v15, %v2571_v16 }
  0x2a   : > { %2122 = vtanh.f32 %v350_v38 }
  0x2b   : > { %2124 = vtanh.f32 %v353_v40 }
  0x2c   : > { %2126 = vtanh.f32 %v352_v41 }
  0x2d   : > { %v2109_v46 = vpop.eup %2108  ;;  %2128 = vtanh.f32 %v355_v47  ;;  %v363_v47 = vadd.f32 %v2676_v15, %v2577_v20 }
  0x2e   : > { %v2111_v48 = vpop.eup %2110  ;;  %v608_v49 = vmul.f32 %v2109_v46, %v2636_v43  ;;  %2130 = vtanh.f32 %v354_v50  ;;  %v362_v50 = vadd.f32 %v2676_v15, %v2563_v12 }
  0x2f   : > { %v606_v52 = vmul.f32 %v2111_v48, %v2636_v43  ;;  %v2113_v54 = vpop.eup %2112  ;;  %2132 = vtanh.f32 %v357_v60 }
  0x30   : > { %v741_v55 = vsel %vm734_vm0, %v608_v49, 0.0  ;;  %v2115_v57 = vpop.eup %2114  ;;  %v609_v59 = vmul.f32 %v2113_v54, %v2636_v43  ;;  %2134 = vtanh.f32 %v356_v63 }
  0x31   : > { %742 = vadd.xlane.f32.xlu1 %v741_v55  ;;  %v735_v58 = vsel %vm734_vm0, %v606_v52, 0.0  ;;  %v2117_v61 = vpop.eup %2116  ;;  %v607_v62 = vmul.f32 %v2115_v57, %v2636_v43  ;;  %2136 = vtanh.f32 %v359_v17 }
  0x32   : > { %736 = vadd.xlane.f32.xlu0 %v735_v58  ;;  %v2119_v2 = vpop.eup %2118  ;;  %v744_v4 = vsel %vm734_vm0, %v609_v59, 0.0  ;;  %v611_v5 = vmul.f32 %v2117_v61, %v2636_v43  ;;  %2138 = vtanh.f32 %v358_v23  ;;  %v365_v58 = vadd.f32 %v2676_v15, %v2588_v24 }
  0x33   : > { %v2121_v7 = vpop.eup %2120  ;;  %v738_v9 = vsel %vm734_vm0, %v607_v62, 0.0  ;;  %v610_v11 = vmul.f32 %v2119_v2, %v2636_v43  ;;  %2140 = vtanh.f32 %v361_v35  ;;  %v364_v61 = vadd.f32 %v2676_v15, %v2591_v25 }
  0x34   : > { %v2123_v14 = vpop.eup %2122  ;;  %v750_v18 = vsel %vm734_vm0, %v611_v5, 0.0  ;;  %v613_v19 = vmul.f32 %v2121_v7, %v2636_v43  ;;  %2142 = vtanh.f32 %v360_v13  ;;  %v367_v5 = vadd.f32 %v2676_v15, %v2597_v28 }
  0x35   : > { %745 = vadd.xlane.f32.xlu1 %v744_v4  ;;  %v2125_v26 = vpop.eup %2124  ;;  %v747_v30 = vsel %vm734_vm0, %v610_v11, 0.0  ;;  %v612_v31 = vmul.f32 %v2123_v14, %v2636_v43  ;;  %2144 = vtanh.f32 %v363_v47  ;;  %v366_v11 = vadd.f32 %v2676_v15, %v2607_v32 }
  0x36   : > { %739 = vadd.xlane.f32.xlu0 %v738_v9  ;;  %v2127_v34 = vpop.eup %2126  ;;  %v756_v36 = vsel %vm734_vm0, %v613_v19, 0.0  ;;  %v615_v38 = vmul.f32 %v2125_v26, %v2636_v43  ;;  %2146 = vtanh.f32 %v362_v50  ;;  %v369_v23 = vadd.f32 %v2676_v15, %v2619_v37 }
  0x37   : > { %v2129_v40 = vpop.eup %2128  ;;  %v753_v41 = vsel %vm734_vm0, %v612_v31, 0.0  ;;  %v614_v45 = vmul.f32 %v2127_v34, %v2636_v43  ;;  %2148 = vtanh.f32 %v365_v58  ;;  %v368_v31 = vadd.f32 %v2676_v15, %v2624_v39 }
  0x38   : > { %v2131_v46 = vpop.eup %2130  ;;  %v762_v48 = vsel %vm734_vm0, %v615_v38, 0.0  ;;  %v617_v49 = vmul.f32 %v2129_v40, %v2636_v43  ;;  %2150 = vtanh.f32 %v364_v61  ;;  %v371_v13 = vadd.f32 %v2676_v15, %v2631_v42 }
  0x39   : > { %751 = vadd.xlane.f32.xlu1 %v750_v18  ;;  %v2133_v52 = vpop.eup %2132  ;;  %v759_v54 = vsel %vm734_vm0, %v614_v45, 0.0  ;;  %v616_v55 = vmul.f32 %v2131_v46, %v2636_v43  ;;  %2152 = vtanh.f32 %v367_v5  ;;  %v370_v45 = vadd.f32 %v2676_v15, %v2639_v44 }
  0x3a   : > { %748 = vadd.xlane.f32.xlu0 %v747_v30  ;;  %v2135_v57 = vpop.eup %2134  ;;  %v768_v59 = vsel %vm734_vm0, %v617_v49, 0.0  ;;  %v619_v60 = vmul.f32 %v2133_v52, %v2636_v43  ;;  %2154 = vtanh.f32 %v366_v11  ;;  %v300_v50 = vcombine.high %v2559_v10, %v2559_v10 }
  0x3b   : > { %v2137_v62 = vpop.eup %2136  ;;  %v765_v63 = vsel %vm734_vm0, %v616_v55, 0.0  ;;  %v618_v2 = vmul.f32 %v2135_v57, %v2636_v43  ;;  %2156 = vtanh.f32 %v369_v23  ;;  %v373_v52 = vadd.f32 %v2676_v15, %v2647_v51 }
  0x3c   : > { %v2139_v4 = vpop.eup %2138  ;;  %v774_v7 = vsel %vm734_vm0, %v619_v60, 0.0  ;;  %v621_v9 = vmul.f32 %v2137_v62, %v2636_v43  ;;  %2158 = vtanh.f32 %v368_v31  ;;  %v372_v57 = vadd.f32 %v2676_v15, %v2651_v53 }
  0x3d   : > { %757 = vadd.xlane.f32.xlu1 %v756_v36  ;;  %v2141_v14 = vpop.eup %2140  ;;  %v771_v17 = vsel %vm734_vm0, %v618_v2, 0.0  ;;  %v620_v18 = vmul.f32 %v2139_v4, %v2636_v43  ;;  %2160 = vtanh.f32 %v371_v13  ;;  %v2745_v61 = vrot.slane %v300_v50, %v2556_v8 }
  0x3e   : > { %754 = vadd.xlane.f32.xlu0 %v753_v41  ;;  %v2143_v19 = vpop.eup %2142  ;;  %v780_v26 = vsel %vm734_vm0, %v621_v9, 0.0  ;;  %v623_v30 = vmul.f32 %v2141_v14, %v2636_v43  ;;  %2162 = vtanh.f32 %v370_v45  ;;  %v375_v62 = vadd.f32 %v2676_v15, %v2665_v1 }
  0x3f   : > { %v2145_v34 = vpop.eup %2144  ;;  %v777_v35 = vsel %vm734_vm0, %v620_v18, 0.0  ;;  %v622_v36 = vmul.f32 %v2143_v19, %v2636_v43  ;;  %2164 = vtanh.f32 %v373_v52  ;;  %v374_v4 = vadd.f32 %v2676_v15, %v2670_v6 }
  0x40   : > { %v2147_v38 = vpop.eup %2146  ;;  %v786_v40 = vsel %vm734_vm0, %v623_v30, 0.0  ;;  %v625_v41 = vmul.f32 %v2145_v34, %v2636_v43  ;;  %2166 = vtanh.f32 %v372_v57  ;;  %v377_v14 = vadd.f32 %v2745_v61, %v2580_v21 }
  0x41   : > { %763 = vadd.xlane.f32.xlu1 %v762_v48  ;;  %v2149_v46 = vpop.eup %2148  ;;  %v783_v47 = vsel %vm734_vm0, %v622_v36, 0.0  ;;  %v624_v48 = vmul.f32 %v2147_v38, %v2636_v43  ;;  %2168 = vtanh.f32 %v375_v62  ;;  %v376_v15 = vadd.f32 %v2745_v61, %v2571_v16 }
  0x42   : > { %760 = vadd.xlane.f32.xlu0 %v759_v54  ;;  %v2151_v49 = vpop.eup %2150  ;;  %v792_v54 = vsel %vm734_vm0, %v625_v41, 0.0  ;;  %v627_v55 = vmul.f32 %v2149_v46, %v2636_v43  ;;  %2170 = vtanh.f32 %v374_v4  ;;  %v379_v31 = vadd.f32 %v2745_v61, %v2577_v20 }
  0x43   : > { %v2153_v58 = vpop.eup %2152  ;;  %v626_v60 = vmul.f32 %v2151_v49, %v2636_v43  ;;  %2172 = vtanh.f32 %v377_v14  ;;  %v378_v36 = vadd.f32 %v2745_v61, %v2563_v12  ;;  %v381_v45 = vadd.f32 %v2745_v61, %v2588_v24 }
  0x44   : > { %v2155_v10 = vpop.eup %2154  ;;  %v629_v2 = vmul.f32 %v2153_v58, %v2636_v43  ;;  %2174 = vtanh.f32 %v376_v15 }
  0x45   : > { %769 = vadd.xlane.f32.xlu1 %v768_v59  ;;  %v789_v59 = vsel %vm734_vm0, %v624_v48, 0.0  ;;  %v2157_v5 = vpop.eup %2156  ;;  %v628_v9 = vmul.f32 %v2155_v10, %v2636_v43  ;;  %2176 = vtanh.f32 %v379_v31  ;;  %v380_v48 = vadd.f32 %v2745_v61, %v2591_v25 }
  0x46   : > { %766 = vadd.xlane.f32.xlu0 %v765_v63  ;;  %v798_v63 = vsel %vm734_vm0, %v627_v55, 0.0  ;;  %v2159_v11 = vpop.eup %2158  ;;  %v631_v18 = vmul.f32 %v2157_v5, %v2636_v43  ;;  %2178 = vtanh.f32 %v378_v36  ;;  %v383_v55 = vadd.f32 %v2745_v61, %v2597_v28 }
  0x47   : > { %v2161_v19 = vpop.eup %2160  ;;  %v801_v23 = vsel %vm734_vm0, %v628_v9, 0.0  ;;  %2180 = vtanh.f32 %v381_v45  ;;  %v389_v36 = vadd.f32 %v2745_v61, %v2647_v51 }
  0x48   : > { %v2163_v30 = vpop.eup %2162  ;;  %v810_v34 = vsel %vm734_vm0, %v631_v18, 0.0  ;;  %2182 = vtanh.f32 %v380_v48  ;;  %v387_v18 = vadd.f32 %v2745_v61, %v2631_v42  ;;  %v391_v48 = vadd.f32 %v2745_v61, %v2665_v1 }
  0x49   : > { %775 = vadd.xlane.f32.xlu1 %v774_v7  ;;  %v795_v7 = vsel %vm734_vm0, %v626_v60, 0.0  ;;  %v2165_v38 = vpop.eup %2164  ;;  %2184 = vtanh.f32 %v383_v55 }
  0x4a   : > { %772 = vadd.xlane.f32.xlu0 %v771_v17  ;;  %v804_v17 = vsel %vm734_vm0, %v629_v2, 0.0  ;;  %v2167_v41 = vpop.eup %2166  ;;  %v385_v2 = vadd.f32 %v2745_v61, %v2619_v37 }
  0x4b   : > { %v2169_v49 = vpop.eup %2168  ;;  %v634_v52 = vmul.f32 %v2167_v41, %v2636_v43 }
  0x4c   : > { %v637_v58 = vmul.f32 %v2169_v49, %v2636_v43 }
  0x4d   : > { %781 = vadd.xlane.f32.xlu1 %v780_v26  ;;  %v630_v26 = vmul.f32 %v2159_v11, %v2636_v43  ;;  %v819_v10 = vsel %vm734_vm0, %v634_v52, 0.0  ;;  %v390_v52 = vadd.f32 %v2745_v61, %v2670_v6 }
  0x4e   : > { %778 = vadd.xlane.f32.xlu0 %v777_v35  ;;  %v633_v35 = vmul.f32 %v2161_v19, %v2636_v43  ;;  %v828_v4 = vsel %vm734_vm0, %v637_v58, 0.0 }
  0x4f   : > { %v807_v13 = vsel %vm734_vm0, %v630_v26, 0.0 }
  0x50   : > { %v816_v46 = vsel %vm734_vm0, %v633_v35, 0.0  ;;  %v302_v35 = vcombine.high %v2655_v56, %v2655_v56 }
  0x51   : > { %787 = vadd.xlane.f32.xlu1 %v786_v40  ;;  %v632_v40 = vmul.f32 %v2163_v30, %v2636_v43 }
  0x52   : > { %784 = vadd.xlane.f32.xlu0 %v783_v47  ;;  %v635_v47 = vmul.f32 %v2165_v38, %v2636_v43 }
  0x53   : > { %v813_v50 = vsel %vm734_vm0, %v632_v40, 0.0  ;;  %v388_v40 = vadd.f32 %v2745_v61, %v2651_v53 }
  0x54   : > { %v822_v57 = vsel %vm734_vm0, %v635_v47, 0.0  ;;  %v2814_v47 = vrot.slane %v302_v35, %v2556_v8 }
  0x55   : > { %793 = vadd.xlane.f32.xlu1 %v792_v54  ;;  %v2171_v54 = vpop.eup %2170 }
  0x56   : > { %790 = vadd.xlane.f32.xlu0 %v789_v59  ;;  %v382_v59 = vadd.f32 %v2745_v61, %v2607_v32  ;;  %v2173_v60 = vpop.eup %2172  ;;  %v636_v62 = vmul.f32 %v2171_v54, %v2636_v43  ;;  %v393_v58 = vadd.f32 %v2814_v47, %v2580_v21 }
  0x57   : > { %v639_v5 = vmul.f32 %v2173_v60, %v2636_v43 }
  0x58   : > { %2186 = vtanh.f32 %v382_v59  ;;  %v825_v11 = vsel %vm734_vm0, %v636_v62, 0.0 }
  0x59   : > { %799 = vadd.xlane.f32.xlu1 %v798_v63  ;;  %v2175_v63 = vpop.eup %2174  ;;  %2188 = vtanh.f32 %v385_v2  ;;  %v834_v15 = vsel %vm734_vm0, %v639_v5, 0.0 }
  0x5a   : > { %796 = vadd.xlane.f32.xlu0 %v795_v7  ;;  %v384_v7 = vadd.f32 %v2745_v61, %v2624_v39  ;;  %v2177_v9 = vpop.eup %2176  ;;  %v638_v14 = vmul.f32 %v2175_v63, %v2636_v43 }
  0x5b   : > { %v641_v19 = vmul.f32 %v2177_v9, %v2636_v43  ;;  %v394_v9 = vadd.f32 %v2814_v47, %v2563_v12 }
  0x5c   : > { %2190 = vtanh.f32 %v384_v7  ;;  %v831_v30 = vsel %vm734_vm0, %v638_v14, 0.0 }
  0x5d   : > { %805 = vadd.xlane.f32.xlu1 %v804_v17  ;;  %v2179_v17 = vpop.eup %2178  ;;  %2192 = vtanh.f32 %v387_v18  ;;  %v840_v38 = vsel %vm734_vm0, %v641_v19, 0.0 }
  0x5e   : > { %802 = vadd.xlane.f32.xlu0 %v801_v23  ;;  %v386_v23 = vadd.f32 %v2745_v61, %v2639_v44  ;;  %v2181_v26 = vpop.eup %2180  ;;  %v640_v31 = vmul.f32 %v2179_v17, %v2636_v43  ;;  %v392_v61 = vadd.f32 %v2814_v47, %v2571_v16 }
  0x60   : > { %2194 = vtanh.f32 %v386_v23  ;;  %v837_v45 = vsel %vm734_vm0, %v640_v31, 0.0 }
  0x61   : > { %811 = vadd.xlane.f32.xlu1 %v810_v34  ;;  %v2183_v34 = vpop.eup %2182  ;;  %2196 = vtanh.f32 %v389_v36  ;;  %v399_v36 = vadd.f32 %v2814_v47, %v2597_v28 }
  0x62   : > { %808 = vadd.xlane.f32.xlu0 %v807_v13  ;;  %v643_v13 = vmul.f32 %v2181_v26, %v2636_v43  ;;  %v2185_v41 = vpop.eup %2184  ;;  %2198 = vtanh.f32 %v388_v40  ;;  %v396_v26 = vadd.f32 %v2814_v47, %v2591_v25  ;;  %v398_v40 = vadd.f32 %v2814_v47, %v2607_v32 }
  0x63   : > { %v2187_v56 = vpop.eup %2186  ;;  %2200 = vtanh.f32 %v391_v48  ;;  %v401_v48 = vadd.f32 %v2814_v47, %v2619_v37 }
  0x64   : > { %v846_v49 = vsel %vm734_vm0, %v643_v13, 0.0  ;;  %v2189_v54 = vpop.eup %2188  ;;  %v644_v8 = vmul.f32 %v2187_v56, %v2636_v43  ;;  %2202 = vtanh.f32 %v390_v52  ;;  %v400_v52 = vadd.f32 %v2814_v47, %v2624_v39 }
  0x65   : > { %817 = vadd.xlane.f32.xlu1 %v816_v46  ;;  %v642_v46 = vmul.f32 %v2183_v34, %v2636_v43  ;;  %v647_v60 = vmul.f32 %v2189_v54, %v2636_v43  ;;  %2204 = vtanh.f32 %v393_v58  ;;  %v403_v58 = vadd.f32 %v2814_v47, %v2631_v42 }
  0x66   : > { %814 = vadd.xlane.f32.xlu0 %v813_v50  ;;  %v645_v50 = vmul.f32 %v2185_v41, %v2636_v43  ;;  %v849_v62 = vsel %vm734_vm0, %v644_v8, 0.0  ;;  %2206 = vtanh.f32 %v392_v61  ;;  %v402_v61 = vadd.f32 %v2814_v47, %v2639_v44 }
  0x67   : > { %v843_v55 = vsel %vm734_vm0, %v642_v46, 0.0  ;;  %v858_v5 = vsel %vm734_vm0, %v647_v60, 0.0 }
  0x68   : > { %v852_v59 = vsel %vm734_vm0, %v645_v50, 0.0 }
  0x69   : > { %823 = vadd.xlane.f32.xlu1 %v822_v57  ;;  %v2191_v57 = vpop.eup %2190 }
  0x6a   : > { %820 = vadd.xlane.f32.xlu0 %v819_v10  ;;  %v2193_v10 = vpop.eup %2192  ;;  %v646_v63 = vmul.f32 %v2191_v57, %v2636_v43 }
  0x6b   : > { %v2195_v2 = vpop.eup %2194  ;;  %v649_v7 = vmul.f32 %v2193_v10, %v2636_v43 }
  0x6c   : > { %v855_v14 = vsel %vm734_vm0, %v646_v63, 0.0  ;;  %v648_v17 = vmul.f32 %v2195_v2, %v2636_v43 }
  0x6d   : > { %829 = vadd.xlane.f32.xlu1 %v828_v4  ;;  %v395_v4 = vadd.f32 %v2814_v47, %v2577_v20  ;;  %v864_v19 = vsel %vm734_vm0, %v649_v7, 0.0 }
  0x6e   : > { %826 = vadd.xlane.f32.xlu0 %v825_v11  ;;  %v2197_v11 = vpop.eup %2196  ;;  %v861_v31 = vsel %vm734_vm0, %v648_v17, 0.0 }
  0x6f   : > { %v2199_v18 = vpop.eup %2198  ;;  %2208 = vtanh.f32 %v395_v4  ;;  %v651_v23 = vmul.f32 %v2197_v11, %v2636_v43  ;;  %v405_v4 = vadd.f32 %v2814_v47, %v2647_v51 }
  0x70   : > { %2210 = vtanh.f32 %v394_v9  ;;  %v650_v34 = vmul.f32 %v2199_v18, %v2636_v43  ;;  %v404_v9 = vadd.f32 %v2814_v47, %v2651_v53 }
  0x71   : > { %835 = vadd.xlane.f32.xlu1 %v834_v15  ;;  %v397_v15 = vadd.f32 %v2814_v47, %v2588_v24 }
  0x72   : > { %832 = vadd.xlane.f32.xlu0 %v831_v30  ;;  %v2201_v30 = vpop.eup %2200 }
  0x73   : > { %v2203_v35 = vpop.eup %2202  ;;  %2212 = vtanh.f32 %v397_v15  ;;  %v653_v13 = vmul.f32 %v2201_v30, %v2636_v43  ;;  %v407_v15 = vadd.f32 %v2814_v47, %v2665_v1 }
  0x74   : > { %2214 = vtanh.f32 %v396_v26  ;;  %v2205_v41 = vpop.eup %2204  ;;  %v652_v46 = vmul.f32 %v2203_v35, %v2636_v43  ;;  %v406_v26 = vadd.f32 %v2814_v47, %v2670_v6  ;;  %v408_v47 = vadd.f32 %v2583_v22, %v2571_v16 }
  0x75   : > { %841 = vadd.xlane.f32.xlu1 %v840_v38  ;;  %v870_v38 = vsel %vm734_vm0, %v651_v23, 0.0  ;;  %v2207_v56 = vpop.eup %2206  ;;  %2216 = vtanh.f32 %v399_v36  ;;  %v655_v50 = vmul.f32 %v2205_v41, %v2636_v43  ;;  %v409_v36 = vadd.f32 %v2583_v22, %v2580_v21 }
  0x76   : > { %838 = vadd.xlane.f32.xlu0 %v837_v45  ;;  %v867_v45 = vsel %vm734_vm0, %v650_v34, 0.0  ;;  %2218 = vtanh.f32 %v398_v40  ;;  %v654_v8 = vmul.f32 %v2207_v56, %v2636_v43  ;;  %v411_v56 = vadd.f32 %v2583_v22, %v2577_v20 }
  0x77   : > { %2220 = vtanh.f32 %v401_v48  ;;  %v413_v20 = vadd.f32 %v2583_v22, %v2588_v24  ;;  %v415_v24 = vadd.f32 %v2583_v22, %v2597_v28  ;;  %v417_v28 = vadd.f32 %v2583_v22, %v2619_v37 }
  0x78   : > { %2222 = vtanh.f32 %v400_v52  ;;  %v419_v37 = vadd.f32 %v2583_v22, %v2631_v42  ;;  %v2939_v42 = vand.u32 127, %v259_v0 }
  0x79   : > { %847 = vadd.xlane.f32.xlu1 %v846_v49  ;;  %v876_v49 = vsel %vm734_vm0, %v653_v13, 0.0  ;;  %v2209_v54 = vpop.eup %2208  ;;  %2224 = vtanh.f32 %v403_v58 }
  0x7a   : > { %844 = vadd.xlane.f32.xlu0 %v843_v55  ;;  %v873_v55 = vsel %vm734_vm0, %v652_v46, 0.0  ;;  %v2211_v57 = vpop.eup %2210  ;;  %v657_v60 = vmul.f32 %v2209_v54, %v2636_v43  ;;  %2226 = vtanh.f32 %v402_v61  ;;  %v1260_v0 = vadd.s32 4294967280, %v2939_v42 }
  0x7b   : > { %v656_v63 = vmul.f32 %v2211_v57, %v2636_v43  ;;  %2228 = vtanh.f32 %v405_v4 }
  0x7c   : > { %2230 = vtanh.f32 %v404_v9 }
  0x7d   : > { %853 = vadd.xlane.f32.xlu1 %v852_v59  ;;  %v882_v59 = vsel %vm734_vm0, %v655_v50, 0.0  ;;  %v2213_v10 = vpop.eup %2212  ;;  %2232 = vtanh.f32 %v407_v15  ;;  %v410_v50 = vadd.f32 %v2583_v22, %v2563_v12  ;;  %v412_v12 = vadd.f32 %v2583_v22, %v2591_v25 }
  0x7e   : > { %850 = vadd.xlane.f32.xlu0 %v849_v62  ;;  %v879_v62 = vsel %vm734_vm0, %v654_v8, 0.0  ;;  %v2215_v2 = vpop.eup %2214  ;;  %v659_v7 = vmul.f32 %v2213_v10, %v2636_v43  ;;  %2234 = vtanh.f32 %v406_v26  ;;  %v414_v25 = vadd.f32 %v2583_v22, %v2607_v32 }
  0x7f   : > { %v2217_v11 = vpop.eup %2216  ;;  %v658_v17 = vmul.f32 %v2215_v2, %v2636_v43  ;;  %2236 = vtanh.f32 %v409_v36  ;;  %v416_v32 = vadd.f32 %v2583_v22, %v2624_v39  ;;  %v418_v39 = vadd.f32 %v2583_v22, %v2639_v44 }
  0x80   : > { %v2219_v18 = vpop.eup %2218  ;;  %v661_v23 = vmul.f32 %v2217_v11, %v2636_v43  ;;  %2238 = vtanh.f32 %v408_v47  ;;  %v420_v44 = vadd.f32 %v2583_v22, %v2651_v53  ;;  %v422_v53 = vadd.f32 %v2583_v22, %v2670_v6 }
  0x81   : > { %859 = vadd.xlane.f32.xlu1 %v858_v5  ;;  %v888_v5 = vsel %vm734_vm0, %v657_v60, 0.0  ;;  %v2221_v30 = vpop.eup %2220  ;;  %v660_v34 = vmul.f32 %v2219_v18, %v2636_v43  ;;  %2240 = vtanh.f32 %v411_v56  ;;  %v1281_v6 = vadd.s32 4294967256, %v2939_v42 }
  0x82   : > { %856 = vadd.xlane.f32.xlu0 %v855_v14  ;;  %v885_v14 = vsel %vm734_vm0, %v656_v63, 0.0  ;;  %v2223_v35 = vpop.eup %2222  ;;  %v663_v13 = vmul.f32 %v2221_v30, %v2636_v43  ;;  %2242 = vtanh.f32 %v410_v50  ;;  %v1267_v50 = vadd.s32 4294967272, %v2939_v42 }
  0x83   : > { %v2225_v40 = vpop.eup %2224  ;;  %v897_v41 = vsel %vm734_vm0, %v660_v34, 0.0  ;;  %2244 = vtanh.f32 %v413_v20 }
  0x84   : > { %v2227_v46 = vpop.eup %2226  ;;  %v906_v48 = vsel %vm734_vm0, %v663_v13, 0.0  ;;  %2246 = vtanh.f32 %v412_v12 }
  0x85   : > { %865 = vadd.xlane.f32.xlu1 %v864_v19  ;;  %v894_v19 = vsel %vm734_vm0, %v659_v7, 0.0  ;;  %v2229_v52 = vpop.eup %2228  ;;  %2248 = vtanh.f32 %v415_v24  ;;  %v2982_v24 = vsub.s32 %v1281_v6, %v2541_v3 }
  0x86   : > { %862 = vadd.xlane.f32.xlu0 %v861_v31  ;;  %v891_v31 = vsel %vm734_vm0, %v658_v17, 0.0  ;;  %v2231_v8 = vpop.eup %2230  ;;  %v667_v58 = vmul.f32 %v2229_v52, %v2636_v43  ;;  %2250 = vtanh.f32 %v414_v25 }
  0x87   : > { %v666_v61 = vmul.f32 %v2231_v8, %v2636_v43  ;;  %2252 = vtanh.f32 %v417_v28 }
  0x88   : > { %2254 = vtanh.f32 %v416_v32 }
  0x89   : > { %871 = vadd.xlane.f32.xlu1 %v870_v38  ;;  %v900_v38 = vsel %vm734_vm0, %v661_v23, 0.0  ;;  %v915_v4 = vsel %vm734_vm0, %v666_v61, 0.0  ;;  %2256 = vtanh.f32 %v419_v37  ;;  %v1309_v37 = vadd.s32 4294967224, %v2939_v42 }
  0x8a   : > { %868 = vadd.xlane.f32.xlu0 %v867_v45  ;;  %v662_v45 = vmul.f32 %v2223_v35, %v2636_v43  ;;  %v421_v35 = vadd.f32 %v2583_v22, %v2647_v51  ;;  %2258 = vtanh.f32 %v418_v39  ;;  %v3006_v39 = vld [vmem:[%s2552_s7 + $0x18] sm:$0xff] }
  0x8c   : > { %v903_v54 = vsel %vm734_vm0, %v662_v45, 0.0  ;;  %2260 = vtanh.f32 %v421_v35  ;;  %v2366_v35 = vld [vmem:[%s2552_s7 + $0x8] sm:$0xff] }
  0x8d   : > { %877 = vadd.xlane.f32.xlu1 %v876_v49  ;;  %v665_v49 = vmul.f32 %v2225_v40, %v2636_v43  ;;  %2262 = vtanh.f32 %v420_v44 }
  0x8e   : > { %874 = vadd.xlane.f32.xlu0 %v873_v55  ;;  %v664_v55 = vmul.f32 %v2227_v46, %v2636_v43 }
  0x8f   : > { %v912_v57 = vsel %vm734_vm0, %v665_v49, 0.0 }
  0x90   : > { %v909_v60 = vsel %vm734_vm0, %v664_v55, 0.0  ;;  %v2961_v55 = vsub.s32 %v1260_v0, %v2541_v3 }
  0x91   : > { %883 = vadd.xlane.f32.xlu1 %v882_v59  ;;  %v2233_v59 = vpop.eup %2232 }
  0x92   : > { %880 = vadd.xlane.f32.xlu0 %v879_v62  ;;  %v2235_v10 = vpop.eup %2234  ;;  %v918_v62 = vsel %vm734_vm0, %v667_v58, 0.0  ;;  %v669_v63 = vmul.f32 %v2233_v59, %v2636_v43  ;;  %v2975_v59 = vsub.s32 %v1267_v50, %v2541_v3 }
  0x93   : > { %v2237_v2 = vpop.eup %2236 }
  0x94   : > { %v2239_v7 = vpop.eup %2238  ;;  %v924_v9 = vsel %vm734_vm0, %v669_v63, 0.0  ;;  %v671_v11 = vmul.f32 %v2237_v2, %v2636_v43  ;;  %v440_v63 = vadd.f32 %v2600_v29, %v2571_v16 }
  0x95   : > { %889 = vadd.xlane.f32.xlu1 %v888_v5  ;;  %v668_v5 = vmul.f32 %v2235_v10, %v2636_v43  ;;  %v670_v18 = vmul.f32 %v2239_v7, %v2636_v43  ;;  %v2990_v7 = vld [vmem:[%s2552_s7 + $0x10] sm:$0xff] }
  0x96   : > { %886 = vadd.xlane.f32.xlu0 %v885_v14  ;;  %v2241_v14 = vpop.eup %2240  ;;  %v426_v28 = vadd.f32 %v2990_v7, %v2594_v27 }
  0x97   : > { %v921_v17 = vsel %vm734_vm0, %v668_v5, 0.0  ;;  %v2243_v15 = vpop.eup %2242  ;;  %v673_v23 = vmul.f32 %v2241_v14, %v2636_v43  ;;  %v927_v30 = vsel %vm734_vm0, %v670_v18, 0.0 }
  0x98   : > { %v2245_v26 = vpop.eup %2244 }
  0x99   : > { %895 = vadd.xlane.f32.xlu1 %v894_v19  ;;  %v930_v19 = vsel %vm734_vm0, %v671_v11, 0.0  ;;  %v2247_v34 = vpop.eup %2246  ;;  %v936_v36 = vsel %vm734_vm0, %v673_v23, 0.0  ;;  %v1302_v23 = vadd.s32 4294967232, %v2939_v42 }
  0x9a   : > { %892 = vadd.xlane.f32.xlu0 %v891_v31  ;;  %v672_v31 = vmul.f32 %v2243_v15, %v2636_v43  ;;  %v2249_v13 = vpop.eup %2248  ;;  %v674_v40 = vmul.f32 %v2247_v34, %v2636_v43  ;;  %v1288_v15 = vadd.s32 4294967248, %v2939_v42 }
  0x9b   : > { %v2251_v51 = vpop.eup %2250  ;;  %v677_v46 = vmul.f32 %v2249_v13, %v2636_v43 }
  0x9c   : > { %v933_v47 = vsel %vm734_vm0, %v672_v31, 0.0  ;;  %v2253_v56 = vpop.eup %2252  ;;  %v676_v49 = vmul.f32 %v2251_v51, %v2636_v43 }
  0x9d   : > { %901 = vadd.xlane.f32.xlu1 %v900_v38  ;;  %v675_v38 = vmul.f32 %v2245_v26, %v2636_v43  ;;  %v2255_v52 = vpop.eup %2254  ;;  %v948_v8 = vsel %vm734_vm0, %v677_v46, 0.0  ;;  %v679_v20 = vmul.f32 %v2253_v56, %v2636_v43  ;;  %v427_v26 = vadd.f32 %v3006_v39, %v2594_v27  ;;  %v2367_v56 = vld [vmem:[%s2552_s7] sm:$0xff] }
  0x9e   : > { %898 = vadd.xlane.f32.xlu0 %v897_v41  ;;  %v423_v41 = vadd.f32 %v2583_v22, %v2665_v1  ;;  %v425_v1 = vadd.f32 %v2594_v27, %v2580_v21  ;;  %v2965_v22 = vsub.s32 %v2939_v42, %v2541_v3  ;;  %v424_v21 = vadd.f32 %v2594_v27, %v2571_v16 }
  0x9f   : > { %v942_v45 = vsel %vm734_vm0, %v675_v38, 0.0  ;;  %v945_v58 = vsel %vm734_vm0, %v676_v49, 0.0  ;;  %v678_v12 = vmul.f32 %v2255_v52, %v2636_v43  ;;  %v3036_v52 = vld [vmem:[%s3585_s2] ss:$0 sm:$0xff] }
  0xa0   : > { %2264 = vtanh.f32 %v423_v41  ;;  %v3021_v41 = vsub.s32 %v1288_v15, %v2541_v3 }
  0xa1   : > { %907 = vadd.xlane.f32.xlu1 %v906_v48  ;;  %v939_v48 = vsel %vm734_vm0, %v674_v40, 0.0  ;;  %2266 = vtanh.f32 %v422_v53  ;;  %v951_v32 = vsel %vm734_vm0, %v678_v12, 0.0  ;;  %v3028_v53 = vsub.s32 %v1302_v23, %v2541_v3 }
  0xa2   : > { %904 = vadd.xlane.f32.xlu0 %v903_v54  ;;  %v1253_v54 = vadd.s32 4294967288, %v2939_v42  ;;  %2268 = vtanh.f32 %v425_v1  ;;  %v442_v1 = vadd.f32 %v2990_v7, %v2600_v29 }
  0xa3   : > { %2270 = vtanh.f32 %v424_v21 }
  0xa4   : > { %v2979_v10 = vsub.s32 %v1253_v54, %v2541_v3  ;;  %2272 = vtanh.f32 %v440_v63  ;;  %v1316_v63 = vadd.s32 4294967216, %v2939_v42 }
  0xa5   : > { %913 = vadd.xlane.f32.xlu1 %v912_v57  ;;  %v2257_v57 = vpop.eup %2256  ;;  %2274 = vtanh.f32 %v426_v28 }
  0xa6   : > { %910 = vadd.xlane.f32.xlu0 %v909_v60  ;;  %v1274_v60 = vadd.s32 4294967264, %v2939_v42  ;;  %v2259_v61 = vpop.eup %2258  ;;  %v681_v5 = vmul.f32 %v2257_v57, %v2636_v43  ;;  %2276 = vtanh.f32 %v427_v26  ;;  %v1337_v26 = vadd.s32 4294967192, %v2939_v42 }
  0xa7   : > { %v2261_v25 = vpop.eup %2260  ;;  %v680_v16 = vmul.f32 %v2259_v61, %v2636_v43  ;;  %v1323_v61 = vadd.s32 4294967208, %v2939_v42 }
  0xa8   : > { %v2998_v14 = vsub.s32 %v1274_v60, %v2541_v3  ;;  %v960_v31 = vsel %vm734_vm0, %v681_v5, 0.0 }
  0xa9   : > { %919 = vadd.xlane.f32.xlu1 %v918_v62  ;;  %v1295_v62 = vadd.s32 4294967240, %v2939_v42  ;;  %v3064_v23 = vsub.s32 %v1323_v61, %v2541_v3 }
  0xaa   : > { %916 = vadd.xlane.f32.xlu0 %v915_v4  ;;  %v954_v4 = vsel %vm734_vm0, %v679_v20, 0.0 }
  0xab   : > { %v3012_v34 = vsub.s32 %v1295_v62, %v2541_v3 }
  0xad   : > { %925 = vadd.xlane.f32.xlu1 %v924_v9 }
  0xae   : > { %922 = vadd.xlane.f32.xlu0 %v921_v17  ;;  %v2263_v17 = vpop.eup %2262 }
  0xaf   : > { %v2265_v38 = vpop.eup %2264  ;;  %v682_v40 = vmul.f32 %v2263_v17, %v2636_v43 }
  0xb0   : > { %v2267_v51 = vpop.eup %2266  ;;  %v685_v54 = vmul.f32 %v3036_v52, %v2265_v38 }
  0xb1   : > { %931 = vadd.xlane.f32.xlu1 %v930_v19  ;;  %v683_v19 = vmul.f32 %v2261_v25, %v2636_v43  ;;  %v456_v43 = vadd.f32 %v2367_v56, %v2610_v33  ;;  %v963_v21 = vsel %vm734_vm0, %v682_v40, 0.0  ;;  %v684_v57 = vmul.f32 %v3036_v52, %v2267_v51  ;;  %v3051_v25 = vld [vmem:[%s2552_s7 + $0x20] sm:$0xff] }
  0xb2   : > { %928 = vadd.xlane.f32.xlu0 %v927_v30  ;;  %v972_v28 = vsel %vm734_vm0, %v685_v54, 0.0  ;;  %v3088_v54 = vld [vmem:[%s2552_s7 + $0x28] sm:$0xff] }
  0xb3   : > { %v966_v46 = vsel %vm734_vm0, %v683_v19, 0.0 }
  0xb5   : > { %937 = vadd.xlane.f32.xlu1 %v936_v36  ;;  %v441_v36 = vadd.f32 %v2366_v35, %v2600_v29 }
  0xb6   : > { %934 = vadd.xlane.f32.xlu0 %v933_v47  ;;  %v957_v47 = vsel %vm734_vm0, %v680_v16, 0.0 }
  0xb7   : > { %2278 = vtanh.f32 %v441_v36 }
  0xb8   : > { %2280 = vtanh.f32 %v456_v43 }
  0xb9   : > { %943 = vadd.xlane.f32.xlu1 %v942_v45  ;;  %v3024_v45 = vsub.s32 %v1309_v37, %v2541_v3  ;;  %2282 = vtanh.f32 %v442_v1  ;;  %v429_v1 = vadd.f32 %v3088_v54, %v2594_v27 }
  0xba   : > { %940 = vadd.xlane.f32.xlu0 %v939_v48  ;;  %v2269_v48 = vpop.eup %2268 }
  0xbb   : > { %v687_v62 = vmul.f32 %v3036_v52, %v2269_v48  ;;  %v3083_v48 = vsub.s32 %v1337_v26, %v2541_v3 }
  0xbd   : > { %949 = vadd.xlane.f32.xlu1 %v948_v8 }
  0xbe   : > { %946 = vadd.xlane.f32.xlu0 %v945_v58  ;;  %v743_v2 = vpop.xlane.xlu1 %742  ;;  %v2271_v58 = vpop.eup %2270 }
  0xbf   : > { %v1264_v9 = vrot.slane %v743_v2, %v2961_v55  ;;  %v737_v11 = vpop.xlane.xlu0 %736  ;;  %v428_v2 = vadd.f32 %v3051_v25, %v2594_v27  ;;  %v686_v15 = vmul.f32 %v3036_v52, %v2271_v58 }
  0xc0   : > { %v1252_v18 = vrot.slane %v737_v11, %v2965_v22  ;;  %v2273_v11 = vpop.eup %2272 }
  0xc1   : > { %955 = vadd.xlane.f32.xlu1 %v954_v4  ;;  %v2275_v37 = vpop.eup %2274  ;;  %2284 = vtanh.f32 %v428_v2 }
  0xc2   : > { %952 = vadd.xlane.f32.xlu0 %v951_v32  ;;  %v746_v30 = vpop.xlane.xlu1 %745 }
  0xc3   : > { %v1271_v44 = vrot.slane %v746_v30, %v2975_v59  ;;  %v740_v13 = vpop.xlane.xlu0 %739  ;;  %v978_v30 = vsel %vm734_vm0, %v687_v62, 0.0 }
  0xc4   : > { %v1257_v0 = vrot.slane %v740_v13, %v2979_v10  ;;  %v443_v13 = vadd.f32 %v3006_v39, %v2600_v29 }
  0xc5   : > { %961 = vadd.xlane.f32.xlu1 %v960_v31  ;;  %v3069_v31 = vsub.s32 %v1316_v63, %v2541_v3 }
  0xc6   : > { %v1259_v49 = vsel %vm1258_vm1, %v1257_v0, %v1252_v18  ;;  %958 = vadd.xlane.f32.xlu0 %v957_v47  ;;  %v752_v50 = vpop.xlane.xlu1 %751  ;;  %v969_v18 = vsel %vm734_vm0, %v684_v57, 0.0  ;;  %v2277_v47 = vpop.eup %2276 }
  0xc7   : > { %v1266_v6 = vsel %vm1265_vm2, %v1264_v9, %v1259_v49  ;;  %v1285_v8 = vrot.slane %v752_v50, %v2982_v24  ;;  %v749_v20 = vpop.xlane.xlu0 %748  ;;  %v457_v9 = vadd.f32 %v2366_v35, %v2610_v33  ;;  %v458_v35 = vadd.f32 %v2990_v7, %v2610_v33  ;;  %v2279_v56 = vpop.eup %2278 }
  0xc8   : > { %v1273_v12 = vsel %vm1272_vm3, %v1271_v44, %v1266_v6  ;;  %v1278_v60 = vrot.slane %v749_v20, %v2998_v14  ;;  %v702_v44 = vmul.f32 %v3036_v52, %v2273_v11  ;;  %v688_v7 = vmul.f32 %v3036_v52, %v2275_v37  ;;  %v2281_v58 = vpop.eup %2280 }
  0xc9   : > { %967 = vadd.xlane.f32.xlu1 %v966_v46  ;;  %2286 = vtanh.f32 %v457_v9  ;;  %v975_v46 = vsel %vm734_vm0, %v686_v15, 0.0  ;;  %v1330_v49 = vadd.s32 4294967200, %v2939_v42  ;;  %v1351_v50 = vadd.s32 4294967176, %v2939_v42  ;;  %v2283_v2 = vpop.eup %2282 }
  0xca   : > { %v1280_v4 = vsel %vm1279_vm4, %v1278_v60, %v1273_v12  ;;  %964 = vadd.xlane.f32.xlu0 %v963_v21  ;;  %v758_v5 = vpop.xlane.xlu1 %757  ;;  %2288 = vtanh.f32 %v458_v35  ;;  %v444_v6 = vadd.f32 %v3051_v25, %v2600_v29  ;;  %v1023_v21 = vsel %vm734_vm0, %v702_v44, 0.0 }
  0xcb   : > { %v1299_v32 = vrot.slane %v758_v5, %v3012_v34  ;;  %v1287_v16 = vsel %vm1286_vm5, %v1285_v8, %v1280_v4  ;;  %v755_v17 = vpop.xlane.xlu0 %754  ;;  %v689_v57 = vmul.f32 %v3036_v52, %v2277_v47  ;;  %2290 = vtanh.f32 %v443_v13  ;;  %v2285_v37 = vpop.eup %2284 }
  0xcc   : > { %v1292_v19 = vrot.slane %v755_v17, %v3021_v41  ;;  %v981_v62 = vsel %vm734_vm0, %v688_v7, 0.0  ;;  %v703_v63 = vmul.f32 %v3036_v52, %v2279_v56  ;;  %v3103_v5 = vsub.s32 %v1330_v49, %v2541_v3 }
  0xcd   : > { %973 = vadd.xlane.f32.xlu1 %v972_v28  ;;  %v1344_v28 = vadd.s32 4294967184, %v2939_v42  ;;  %v3107_v9 = vsub.s32 %v1351_v50, %v2541_v3  ;;  %2292 = vtanh.f32 %v444_v6  ;;  %v459_v11 = vadd.f32 %v3006_v39, %v2610_v33  ;;  %v3140_v6 = vld [vmem:[%s2552_s7 + $0x38] sm:$0xff] }
  0xce   : > { %v1294_v36 = vsel %vm1293_vm6, %v1292_v19, %v1287_v16  ;;  %970 = vadd.xlane.f32.xlu0 %v969_v18  ;;  %v764_v38 = vpop.xlane.xlu1 %763  ;;  %v984_v15 = vsel %vm734_vm0, %v689_v57, 0.0  ;;  %v718_v42 = vmul.f32 %v3036_v52, %v2281_v58  ;;  %2294 = vtanh.f32 %v429_v1 }
  0xcf   : > { %v1313_v40 = vrot.slane %v764_v38, %v3024_v45  ;;  %v1301_v51 = vsel %vm1300_vm7, %v1299_v32, %v1294_v36  ;;  %v761_v0 = vpop.xlane.xlu0 %760  ;;  %v3112_v32 = vld [vmem:[%s2552_s7 + $0x30] sm:$0xff]  ;;  %v704_v35 = vmul.f32 %v3036_v52, %v2283_v2  ;;  %v3125_v44 = vsub.s32 %v1344_v28, %v2541_v3 }
  0xd0   : > { %v1306_v43 = vrot.slane %v761_v0, %v3028_v53  ;;  %v430_v16 = vadd.f32 %v3112_v32, %v2594_v27  ;;  %v445_v13 = vadd.f32 %v3088_v54, %v2600_v29  ;;  %v460_v47 = vadd.f32 %v3051_v25, %v2610_v33 }
  0xd1   : > { %979 = vadd.xlane.f32.xlu1 %v978_v30  ;;  %v1026_v30 = vsel %vm734_vm0, %v703_v63, 0.0  ;;  %v1071_v0 = vsel %vm734_vm0, %v718_v42, 0.0  ;;  %v1029_v49 = vsel %vm734_vm0, %v704_v35, 0.0 }
  0xd2   : > { %v1308_v8 = vsel %vm1307_vm8, %v1306_v43, %v1301_v51  ;;  %976 = vadd.xlane.f32.xlu0 %v975_v46  ;;  %v770_v20 = vpop.xlane.xlu1 %769  ;;  %2296 = vtanh.f32 %v430_v16  ;;  %v690_v46 = vmul.f32 %v3036_v52, %v2285_v37  ;;  %v461_v16 = vadd.f32 %v3088_v54, %v2610_v33 }
  0xd3   : > { %v1327_v12 = vrot.slane %v770_v20, %v3064_v23  ;;  %v1315_v60 = vsel %vm1314_vm9, %v1313_v40, %v1308_v8  ;;  %v767_v61 = vpop.xlane.xlu0 %766  ;;  %v2287_v36 = vpop.eup %2286  ;;  %2298 = vtanh.f32 %v459_v11  ;;  %v431_v8 = vadd.f32 %v3140_v6, %v2594_v27 }
  0xd4   : > { %v1320_v4 = vrot.slane %v767_v61, %v3069_v31  ;;  %v2289_v3 = vpop.eup %2288  ;;  %v719_v25 = vmul.f32 %v3036_v52, %v2287_v36  ;;  %2300 = vtanh.f32 %v460_v47  ;;  %v446_v20 = vadd.f32 %v3112_v32, %v2600_v29 }
  0xd5   : > { %1024 = vadd.xlane.f32.xlu1 %v1023_v21  ;;  %v2291_v50 = vpop.eup %2290  ;;  %v987_v58 = vsel %vm734_vm0, %v690_v46, 0.0  ;;  %2302 = vtanh.f32 %v445_v13  ;;  %v447_v13 = vadd.f32 %v3140_v6, %v2600_v29  ;;  %v462_v47 = vadd.f32 %v3112_v32, %v2610_v33 }
  0xd6   : > { %v1322_v17 = vsel %vm1321_vm10, %v1320_v4, %v1315_v60  ;;  %982 = vadd.xlane.f32.xlu0 %v981_v62  ;;  %v776_v18 = vpop.xlane.xlu1 %775  ;;  %v1074_v2 = vsel %vm734_vm0, %v719_v25, 0.0  ;;  %v705_v4 = vmul.f32 %v3036_v52, %v2291_v50  ;;  %2304 = vtanh.f32 %v446_v20 }
  0xd7   : > { %v1341_v19 = vrot.slane %v776_v18, %v3083_v48  ;;  %v1329_v26 = vsel %vm1328_vm11, %v1327_v12, %v1322_v17  ;;  %v773_v39 = vpop.xlane.xlu0 %772  ;;  %v720_v12 = vmul.f32 %v3036_v52, %v2289_v3  ;;  %v2293_v60 = vpop.eup %2292  ;;  %v3159_v17 = vld [vmem:[%s2552_s7 + $0x40] sm:$0xff]  ;;  %2306 = vtanh.f32 %v431_v8 }
  0xd8   : > { %v1334_v38 = vrot.slane %v773_v39, %v3103_v5  ;;  %v2295_v28 = vpop.eup %2294  ;;  %v432_v18 = vadd.f32 %v3159_v17, %v2594_v27  ;;  %v1032_v54 = vsel %vm734_vm0, %v705_v4, 0.0  ;;  %v448_v20 = vadd.f32 %v3159_v17, %v2600_v29 }
  0xd9   : > { %985 = vadd.xlane.f32.xlu1 %v984_v15  ;;  %v1077_v37 = vsel %vm734_vm0, %v720_v12, 0.0  ;;  %v691_v35 = vmul.f32 %v3036_v52, %v2295_v28 }
  0xda   : > { %v1336_v40 = vsel %vm3587_vm12, %v1334_v38, %v1329_v26  ;;  %1027 = vadd.xlane.f32.xlu0 %v1026_v30  ;;  %v782_v51 = vpop.xlane.xlu1 %781  ;;  %2308 = vtanh.f32 %v432_v18  ;;  %v463_v18 = vadd.f32 %v3140_v6, %v2610_v33 }
  0xdb   : > { %v1355_v7 = vrot.slane %v782_v51, %v3107_v9  ;;  %v1343_v56 = vsel %vm1342_vm13, %v1341_v19, %v1336_v40  ;;  %v779_v43 = vpop.xlane.xlu0 %778  ;;  %v706_v19 = vmul.f32 %v3036_v52, %v2293_v60  ;;  %2310 = vtanh.f32 %v461_v16 }
  0xdc   : > { %v1348_v1 = vrot.slane %v779_v43, %v3125_v44  ;;  %v2297_v26 = vpop.eup %2296  ;;  %2312 = vtanh.f32 %v462_v47 }
  0xdd   : > { %1072 = vadd.xlane.f32.xlu1 %v1071_v0  ;;  %v2299_v36 = vpop.eup %2298  ;;  %v1035_v0 = vsel %vm734_vm0, %v706_v19, 0.0  ;;  %v692_v46 = vmul.f32 %v3036_v52, %v2297_v26  ;;  %2314 = vtanh.f32 %v447_v13 }
  0xde   : > { %v1350_v21 = vsel %vm1349_vm14, %v1348_v1, %v1343_v56  ;;  %1030 = vadd.xlane.f32.xlu0 %v1029_v49  ;;  %v788_v57 = vpop.xlane.xlu1 %787  ;;  %v2301_v3 = vpop.eup %2300  ;;  %v990_v49 = vsel %vm734_vm0, %v691_v35, 0.0  ;;  %v721_v32 = vmul.f32 %v3036_v52, %v2299_v36  ;;  %v3183_v1 = vld [vmem:[%s2552_s7 + $0x48] sm:$0xff]  ;;  %2316 = vtanh.f32 %v448_v20  ;;  %v3225_v20 = vld [vmem:[%s2552_s7 + $0x58] sm:$0xff] }
  0xdf   : > { %v3150_v61 = vsel %vm1356_vm15, %v1355_v7, %v1350_v21  ;;  %v1365_v62 = vrot.slane %v788_v57, %v2979_v10  ;;  %v785_v63 = vpop.xlane.xlu0 %784  ;;  %v2303_v25 = vpop.eup %2302  ;;  %v433_v8 = vadd.f32 %v3183_v1, %v2594_v27  ;;  %v722_v12 = vmul.f32 %v3036_v52, %v2301_v3 }
  0xe0   : > { %v1361_v11 = vrot.slane %v785_v63, %v2965_v22  ;;  %v2305_v60 = vpop.eup %2304  ;;  %v1080_v4 = vsel %vm734_vm0, %v721_v32, 0.0  ;;  %v707_v28 = vmul.f32 %v3036_v52, %v2303_v25 }
  0xe1   : > { %988 = vadd.xlane.f32.xlu1 %v987_v58  ;;  %v993_v58 = vsel %vm734_vm0, %v692_v46, 0.0  ;;  %v1083_v26 = vsel %vm734_vm0, %v722_v12, 0.0  ;;  %2318 = vtanh.f32 %v433_v8 }
  0xe2   : > { %v1366_v15 = vsel %vm1258_vm1, %v1365_v62, %v1361_v11  ;;  %1075 = vadd.xlane.f32.xlu0 %v1074_v2  ;;  %v794_v42 = vpop.xlane.xlu1 %793  ;;  %v2307_v11 = vpop.eup %2306  ;;  %v1038_v36 = vsel %vm734_vm0, %v707_v28, 0.0 }
  0xe3   : > { %v1375_v39 = vrot.slane %v794_v42, %v2975_v59  ;;  %v791_v30 = vpop.xlane.xlu0 %790 }
  0xe4   : > { %v1370_v38 = vrot.slane %v791_v30, %v2961_v55  ;;  %v2309_v30 = vpop.eup %2308 }
  0xe5   : > { %1078 = vadd.xlane.f32.xlu1 %v1077_v37  ;;  %v2311_v13 = vpop.eup %2310 }
  0xe6   : > { %v1371_v40 = vsel %vm1265_vm2, %v1370_v38, %v1366_v15  ;;  %1033 = vadd.xlane.f32.xlu0 %v1032_v54  ;;  %v800_v51 = vpop.xlane.xlu1 %799  ;;  %v3200_v15 = vld [vmem:[%s2552_s7 + $0x50] sm:$0xff]  ;;  %v693_v38 = vmul.f32 %v3036_v52, %v2307_v11 }
  0xe7   : > { %v1385_v7 = vrot.slane %v800_v51, %v2982_v24  ;;  %v1376_v56 = vsel %vm1272_vm3, %v1375_v39, %v1371_v40  ;;  %v797_v43 = vpop.xlane.xlu0 %796  ;;  %v434_v42 = vadd.f32 %v3200_v15, %v2594_v27  ;;  %v708_v39 = vmul.f32 %v3036_v52, %v2305_v60 }
  0xe8   : > { %v1380_v50 = vrot.slane %v797_v43, %v2998_v14  ;;  %v449_v40 = vadd.f32 %v3183_v1, %v2600_v29  ;;  %v464_v51 = vadd.f32 %v3159_v17, %v2610_v33  ;;  %v996_v25 = vsel %vm734_vm0, %v693_v38, 0.0 }
  0xe9   : > { %1036 = vadd.xlane.f32.xlu1 %v1035_v0  ;;  %2320 = vtanh.f32 %v434_v42  ;;  %v1041_v3 = vsel %vm734_vm0, %v708_v39, 0.0  ;;  %v723_v17 = vmul.f32 %v3036_v52, %v2311_v13 }
  0xea   : > { %v1381_v21 = vsel %vm1279_vm4, %v1380_v50, %v1376_v56  ;;  %991 = vadd.xlane.f32.xlu0 %v990_v49  ;;  %v806_v57 = vpop.xlane.xlu1 %805  ;;  %2322 = vtanh.f32 %v463_v18  ;;  %v2313_v56 = vpop.eup %2312 }
  0xeb   : > { %v1395_v62 = vrot.slane %v806_v57, %v3012_v34  ;;  %v1386_v63 = vsel %vm1286_vm5, %v1385_v7, %v1381_v21  ;;  %v803_v2 = vpop.xlane.xlu0 %802  ;;  %v694_v7 = vmul.f32 %v3036_v52, %v2309_v30  ;;  %v2315_v50 = vpop.eup %2314  ;;  %2324 = vtanh.f32 %v464_v51 }
  0xec   : > { %v1390_v16 = vrot.slane %v803_v2, %v3021_v41  ;;  %v435_v21 = vadd.f32 %v3225_v20, %v2594_v27  ;;  %v450_v57 = vadd.f32 %v3200_v15, %v2600_v29  ;;  %2326 = vtanh.f32 %v449_v40 }
  0xed   : > { %994 = vadd.xlane.f32.xlu1 %v993_v58  ;;  %v999_v60 = vsel %vm734_vm0, %v694_v7, 0.0  ;;  %v1086_v11 = vsel %vm734_vm0, %v723_v17, 0.0 }
  0xee   : > { %v1391_v37 = vsel %vm1293_vm6, %v1390_v16, %v1386_v63  ;;  %1081 = vadd.xlane.f32.xlu0 %v1080_v4  ;;  %v812_v19 = vpop.xlane.xlu1 %811  ;;  %v2317_v63 = vpop.eup %2316  ;;  %v709_v16 = vmul.f32 %v3036_v52, %v2315_v50  ;;  %2328 = vtanh.f32 %v450_v57 }
  0xef   : > { %v1405_v54 = vrot.slane %v812_v19, %v3024_v45  ;;  %v1396_v35 = vsel %vm1300_vm7, %v1395_v62, %v1391_v37  ;;  %v809_v6 = vpop.xlane.xlu0 %808  ;;  %v724_v62 = vmul.f32 %v3036_v52, %v2313_v56  ;;  %v2319_v18 = vpop.eup %2318  ;;  %v465_v37 = vadd.f32 %v3183_v1, %v2610_v33  ;;  %v3242_v19 = vld [vmem:[%s2552_s7 + $0x60] sm:$0xff] }
  0xf0   : > { %v1400_v47 = vrot.slane %v809_v6, %v3028_v53  ;;  %2330 = vtanh.f32 %v435_v21  ;;  %v1044_v13 = vsel %vm734_vm0, %v709_v16, 0.0 }
  0xf1   : > { %1084 = vadd.xlane.f32.xlu1 %v1083_v26  ;;  %v436_v26 = vadd.f32 %v3242_v19, %v2594_v27 }
  0xf2   : > { %v1401_v0 = vsel %vm1307_vm8, %v1400_v47, %v1396_v35  ;;  %1039 = vadd.xlane.f32.xlu0 %v1038_v36  ;;  %v818_v46 = vpop.xlane.xlu1 %817  ;;  %v710_v35 = vmul.f32 %v3036_v52, %v2317_v63  ;;  %v695_v47 = vmul.f32 %v3036_v52, %v2319_v18 }
  0xf3   : > { %v1415_v43 = vrot.slane %v818_v46, %v3064_v23  ;;  %v1406_v49 = vsel %vm1314_vm9, %v1405_v54, %v1401_v0  ;;  %v815_v32 = vpop.xlane.xlu0 %814  ;;  %v1089_v54 = vsel %vm734_vm0, %v724_v62, 0.0  ;;  %v2321_v6 = vpop.eup %2320  ;;  %2332 = vtanh.f32 %v436_v26 }
  0xf4   : > { %v1410_v8 = vrot.slane %v815_v32, %v3069_v31  ;;  %v2323_v40 = vpop.eup %2322  ;;  %v451_v0 = vadd.f32 %v3225_v20, %v2600_v29  ;;  %v466_v46 = vadd.f32 %v3200_v15, %v2610_v33  ;;  %v1047_v56 = vsel %vm734_vm0, %v710_v35, 0.0 }
  0xf5   : > { %1042 = vadd.xlane.f32.xlu1 %v1041_v3  ;;  %2334 = vtanh.f32 %v465_v37  ;;  %v1002_v50 = vsel %vm734_vm0, %v695_v47, 0.0  ;;  %v725_v15 = vmul.f32 %v3036_v52, %v2323_v40  ;;  %v467_v26 = vadd.f32 %v3225_v20, %v2610_v33 }
  0xf6   : > { %v1411_v58 = vsel %vm1321_vm10, %v1410_v8, %v1406_v49  ;;  %997 = vadd.xlane.f32.xlu0 %v996_v25  ;;  %v824_v12 = vpop.xlane.xlu1 %823  ;;  %v2325_v49 = vpop.eup %2324  ;;  %2336 = vtanh.f32 %v466_v46 }
  0xf7   : > { %v1425_v2 = vrot.slane %v824_v12, %v3083_v48  ;;  %v1416_v4 = vsel %vm1328_vm11, %v1415_v43, %v1411_v58  ;;  %v821_v28 = vpop.xlane.xlu0 %820  ;;  %v696_v43 = vmul.f32 %v3036_v52, %v2321_v6  ;;  %v2327_v8 = vpop.eup %2326  ;;  %v3271_v58 = vld [vmem:[%s2552_s7 + $0x68] sm:$0xff]  ;;  %2338 = vtanh.f32 %v451_v0 }
  0xf8   : > { %v1420_v42 = vrot.slane %v821_v28, %v3103_v5  ;;  %v437_v12 = vadd.f32 %v3271_v58, %v2594_v27  ;;  %v1092_v16 = vsel %vm734_vm0, %v725_v15, 0.0  ;;  %v711_v18 = vmul.f32 %v3036_v52, %v2327_v8 }
  0xf9   : > { %1000 = vadd.xlane.f32.xlu1 %v999_v60  ;;  %v452_v60 = vadd.f32 %v3242_v19, %v2600_v29  ;;  %v453_v46 = vadd.f32 %v3271_v58, %v2600_v29 }
  0xfa   : > { %v1421_v39 = vsel %vm3587_vm12, %v1420_v42, %v1416_v4  ;;  %1087 = vadd.xlane.f32.xlu0 %v1086_v11  ;;  %v830_v30 = vpop.xlane.xlu1 %829  ;;  %vm1911_vm12 = vcmask 1041409   ;;  %v2329_v4 = vpop.eup %2328  ;;  %v1050_v47 = vsel %vm734_vm0, %v711_v18, 0.0 }
  0xfb   : > { %v1435_v36 = vrot.slane %v830_v30, %v3107_v9  ;;  %v1426_v38 = vsel %vm1342_vm13, %v1425_v2, %v1421_v39  ;;  %v827_v1 = vpop.xlane.xlu0 %826  ;;  %v726_v2 = vmul.f32 %v3036_v52, %v2325_v49  ;;  %v2331_v42 = vpop.eup %2330  ;;  %2340 = vtanh.f32 %v452_v60  ;;  %v3287_v39 = vld [vmem:[%s2552_s7 + $0x70] sm:$0xff] }
  0xfc   : > { %v1430_v51 = vrot.slane %v827_v1, %v3125_v44  ;;  %v438_v30 = vadd.f32 %v3287_v39, %v2594_v27  ;;  %2342 = vtanh.f32 %v437_v12  ;;  %v697_v40 = vmul.f32 %v3036_v52, %v2331_v42  ;;  %v2380_v12 = vld [vmem:[%s2552_s7 + $0x78] sm:$0xff] }
  0xfd   : > { %1090 = vadd.xlane.f32.xlu1 %v1089_v54  ;;  %v1095_v6 = vsel %vm734_vm0, %v726_v2, 0.0  ;;  %v439_v60 = vadd.f32 %v2380_v12, %v2594_v27 }
  0xfe   : > { %v1431_v3 = vsel %vm1349_vm14, %v1430_v51, %v1426_v38  ;;  %1045 = vadd.xlane.f32.xlu0 %v1044_v13  ;;  %v836_v7 = vpop.xlane.xlu1 %835  ;;  %v2333_v38 = vpop.eup %2332  ;;  %2344 = vtanh.f32 %v438_v30  ;;  %v1008_v15 = vsel %vm734_vm0, %v697_v40, 0.0  ;;  %v469_v30 = vadd.f32 %v3271_v58, %v2610_v33 }
  0xff   : > { %v1436_v32 = vsel %vm1356_vm15, %v1435_v36, %v1431_v3  ;;  %v1444_v25 = vrot.slane %v836_v7, %v2979_v10  ;;  %v833_v17 = vpop.xlane.xlu0 %832  ;;  %v712_v36 = vmul.f32 %v3036_v52, %v2329_v4  ;;  %v2335_v51 = vpop.eup %2334  ;;  %v468_v3 = vadd.f32 %v3242_v19, %v2610_v33 }
 0x100   : > { %v3267_v21 = vsel %vm1911_vm12, %v1436_v32, %v3150_v61  ;;  %v1440_v57 = vrot.slane %v833_v17, %v2965_v22  ;;  %v1005_v61 = vsel %vm734_vm0, %v696_v43, 0.0  ;;  %v698_v49 = vmul.f32 %v3036_v52, %v2333_v38  ;;  %v2337_v32 = vpop.eup %2336 }
 0x101   : > { %1048 = vadd.xlane.f32.xlu1 %v1047_v56  ;;  %v1053_v43 = vsel %vm734_vm0, %v712_v36, 0.0  ;;  %2346 = vtanh.f32 %v467_v26  ;;  %v727_v19 = vmul.f32 %v3036_v52, %v2335_v51  ;;  %v2339_v8 = vpop.eup %2338  ;;  %v728_v4 = vmul.f32 %v3036_v52, %v2337_v32 }
 0x102   : > { %v1445_v62 = vsel %vm1258_vm1, %v1444_v25, %v1440_v57  ;;  %1003 = vadd.xlane.f32.xlu0 %v1002_v50  ;;  %v842_v63 = vpop.xlane.xlu1 %841  ;;  %2348 = vtanh.f32 %v468_v3  ;;  %v1011_v2 = vsel %vm734_vm0, %v698_v49, 0.0  ;;  %v713_v42 = vmul.f32 %v3036_v52, %v2339_v8 }
 0x103   : > { %v1454_v28 = vrot.slane %v842_v63, %v2975_v59  ;;  %v839_v11 = vpop.xlane.xlu0 %838  ;;  %2350 = vtanh.f32 %v453_v46  ;;  %v1098_v27 = vsel %vm734_vm0, %v727_v19, 0.0  ;;  %v1101_v36 = vsel %vm734_vm0, %v728_v4, 0.0 }
 0x104   : > { %v1449_v37 = vrot.slane %v839_v11, %v2961_v55  ;;  %v1056_v40 = vsel %vm734_vm0, %v713_v42, 0.0  ;;  %v471_v46 = vadd.f32 %v2380_v12, %v2610_v33  ;;  %vm3590_vm12 = vcmask 851712  }
 0x105   : > { %1006 = vadd.xlane.f32.xlu1 %v1005_v61 }
 0x106   : > { %v1450_v54 = vsel %vm1265_vm2, %v1449_v37, %v1445_v62  ;;  %1093 = vadd.xlane.f32.xlu0 %v1092_v16  ;;  %v848_v35 = vpop.xlane.xlu1 %847  ;;  %v454_v62 = vadd.f32 %v3287_v39, %v2600_v29 }
 0x107   : > { %v1464_v1 = vrot.slane %v848_v35, %v2982_v24  ;;  %v1455_v13 = vsel %vm1272_vm3, %v1454_v28, %v1450_v54  ;;  %v845_v20 = vpop.xlane.xlu0 %844  ;;  %v2341_v28 = vpop.eup %2340  ;;  %v455_v54 = vadd.f32 %v2380_v12, %v2600_v29 }
 0x108   : > { %v1459_v0 = vrot.slane %v845_v20, %v2998_v14  ;;  %v2343_v37 = vpop.eup %2342  ;;  %2352 = vtanh.f32 %v454_v62  ;;  %v714_v38 = vmul.f32 %v3036_v52, %v2341_v28 }
 0x109   : > { %1096 = vadd.xlane.f32.xlu1 %v1095_v6  ;;  %2354 = vtanh.f32 %v439_v60  ;;  %v699_v58 = vmul.f32 %v3036_v52, %v2343_v37 }
 0x10a   : > { %v1460_v7 = vsel %vm1279_vm4, %v1459_v0, %v1455_v13  ;;  %1051 = vadd.xlane.f32.xlu0 %v1050_v47  ;;  %v854_v56 = vpop.xlane.xlu1 %853  ;;  %2356 = vtanh.f32 %v455_v54  ;;  %v470_v0 = vadd.f32 %v3287_v39, %v2610_v33 }
 0x10b   : > { %v1474_v25 = vrot.slane %v854_v56, %v3012_v34  ;;  %v1465_v17 = vsel %vm1286_vm5, %v1464_v1, %v1460_v7  ;;  %v851_v50 = vpop.xlane.xlu0 %850  ;;  %v2345_v1 = vpop.eup %2344  ;;  %v1059_v56 = vsel %vm734_vm0, %v714_v38, 0.0  ;;  %2358 = vtanh.f32 %v469_v30 }
 0x10c   : > { %v1469_v57 = vrot.slane %v851_v50, %v3021_v41  ;;  %v2347_v29 = vpop.eup %2346  ;;  %v1014_v50 = vsel %vm734_vm0, %v699_v58, 0.0  ;;  %2360 = vtanh.f32 %v471_v46 }
 0x10d   : > { %1054 = vadd.xlane.f32.xlu1 %v1053_v43  ;;  %v700_v43 = vmul.f32 %v3036_v52, %v2345_v1  ;;  %v2349_v49 = vpop.eup %2348  ;;  %v729_v39 = vmul.f32 %v3036_v52, %v2347_v29  ;;  %2362 = vtanh.f32 %v470_v0 }
 0x10e   : > { %v1470_v63 = vsel %vm1293_vm6, %v1469_v57, %v1465_v17  ;;  %1009 = vadd.xlane.f32.xlu0 %v1008_v15  ;;  %v860_v61 = vpop.xlane.xlu1 %859  ;;  %v2351_v33 = vpop.eup %2350  ;;  %v730_v12 = vmul.f32 %v3036_v52, %v2349_v49 }
 0x10f   : > { %v1484_v11 = vrot.slane %v860_v61, %v3024_v45  ;;  %v1475_v16 = vsel %vm1300_vm7, %v1474_v25, %v1470_v63  ;;  %v857_v18 = vpop.xlane.xlu0 %856  ;;  %v1017_v57 = vsel %vm734_vm0, %v700_v43, 0.0  ;;  %v715_v4 = vmul.f32 %v3036_v52, %v2351_v33 }
 0x110   : > { %v1479_v26 = vrot.slane %v857_v18, %v3028_v53 }
 0x111   : > { %1012 = vadd.xlane.f32.xlu1 %v1011_v2  ;;  %v1104_v2 = vsel %vm734_vm0, %v729_v39, 0.0 }
 0x112   : > { %v1480_v35 = vsel %vm1307_vm8, %v1479_v26, %v1475_v16  ;;  %1099 = vadd.xlane.f32.xlu0 %v1098_v27  ;;  %v866_v6 = vpop.xlane.xlu1 %865  ;;  %v2353_v60 = vpop.eup %2352  ;;  %v1107_v27 = vsel %vm734_vm0, %v730_v12, 0.0 }
 0x113   : > { %v1494_v13 = vrot.slane %v866_v6, %v3064_v23  ;;  %v1485_v20 = vsel %vm1314_vm9, %v1484_v11, %v1480_v35  ;;  %v863_v47 = vpop.xlane.xlu0 %862  ;;  %v2355_v28 = vpop.eup %2354  ;;  %v716_v42 = vmul.f32 %v3036_v52, %v2353_v60  ;;  %v1062_v35 = vsel %vm734_vm0, %v715_v4, 0.0 }
 0x114   : > { %v1489_v51 = vrot.slane %v863_v47, %v3069_v31  ;;  %v2357_v37 = vpop.eup %2356  ;;  %v701_v6 = vmul.f32 %v3036_v52, %v2355_v28 }
 0x115   : > { %1102 = vadd.xlane.f32.xlu1 %v1101_v36  ;;  %v2359_v36 = vpop.eup %2358  ;;  %v1065_v47 = vsel %vm734_vm0, %v716_v42, 0.0 }
 0x116   : > { %v1490_v3 = vsel %vm1321_vm10, %v1489_v51, %v1485_v20  ;;  %1057 = vadd.xlane.f32.xlu0 %v1056_v40  ;;  %v872_v7 = vpop.xlane.xlu1 %871  ;;  %v717_v40 = vmul.f32 %v3036_v52, %v2357_v37  ;;  %v2361_v58 = vpop.eup %2360  ;;  %v1020_v0 = vsel %vm734_vm0, %v701_v6, 0.0 }
 0x117   : > { %v1504_v32 = vrot.slane %v872_v7, %v3083_v48  ;;  %v1495_v25 = vsel %vm1328_vm11, %v1494_v13, %v1490_v3  ;;  %v869_v17 = vpop.xlane.xlu0 %868  ;;  %v2363_v46 = vpop.eup %2362  ;;  %v733_v49 = vmul.f32 %v3036_v52, %v2361_v58 }
 0x118   : > { %v1499_v15 = vrot.slane %v869_v17, %v3103_v5  ;;  %v1068_v43 = vsel %vm734_vm0, %v717_v40, 0.0  ;;  %v732_v39 = vmul.f32 %v3036_v52, %v2363_v46 }
 0x119   : > { %1060 = vadd.xlane.f32.xlu1 %v1059_v56 }
 0x11a   : > { %v1500_v19 = vsel %vm3590_vm12, %v1499_v15, %v1495_v25  ;;  %1015 = vadd.xlane.f32.xlu0 %v1014_v50  ;;  %v878_v8 = vpop.xlane.xlu1 %877  ;;  %vm1913_vm12 = vcmask 1042434  }
 0x11b   : > { %v1514_v62 = vrot.slane %v878_v8, %v3107_v9  ;;  %v1505_v63 = vsel %vm1342_vm13, %v1504_v32, %v1500_v19  ;;  %v875_v61 = vpop.xlane.xlu0 %874  ;;  %v1116_v8 = vsel %vm734_vm0, %v733_v49, 0.0 }
 0x11c   : > { %v1509_v11 = vrot.slane %v875_v61, %v3125_v44 }
 0x11d   : > { %1018 = vadd.xlane.f32.xlu1 %v1017_v57 }
 0x11e   : > { %v1510_v16 = vsel %vm1349_vm14, %v1509_v11, %v1505_v63  ;;  %1105 = vadd.xlane.f32.xlu0 %v1104_v2  ;;  %v884_v18 = vpop.xlane.xlu1 %883 }
 0x11f   : > { %v1515_v26 = vsel %vm1356_vm15, %v1514_v62, %v1510_v16  ;;  %v1523_v30 = vrot.slane %v884_v18, %v2979_v10  ;;  %v881_v54 = vpop.xlane.xlu0 %880  ;;  %v1113_v62 = vsel %vm734_vm0, %v732_v39, 0.0 }
 0x120   : > { %v3361_v38 = vsel %vm1913_vm12, %v1515_v26, %v3267_v21  ;;  %v1519_v1 = vrot.slane %v881_v54, %v2965_v22  ;;  %v731_v21 = vmul.f32 %v3036_v52, %v2359_v36  ;;  %vm1915_vm12 = vcmask 1043459  }
 0x121   : > { %1108 = vadd.xlane.f32.xlu1 %v1107_v27 }
 0x122   : > { %v1524_v13 = vsel %vm1258_vm1, %v1523_v30, %v1519_v1  ;;  %1063 = vadd.xlane.f32.xlu0 %v1062_v35  ;;  %v890_v20 = vpop.xlane.xlu1 %889  ;;  %v1110_v50 = vsel %vm734_vm0, %v731_v21, 0.0  ;;  %vm3591_vm0 = vcmask 851712  }
 0x123   : > { %v1533_v29 = vrot.slane %v890_v20, %v2975_v59  ;;  %v887_v51 = vpop.xlane.xlu0 %886 }
 0x124   : > { %v1528_v3 = vrot.slane %v887_v51, %v2961_v55 }
 0x125   : > { %1066 = vadd.xlane.f32.xlu1 %v1065_v47 }
 0x126   : > { %v1529_v7 = vsel %vm1265_vm2, %v1528_v3, %v1524_v13  ;;  %1021 = vadd.xlane.f32.xlu0 %v1020_v0  ;;  %v896_v56 = vpop.xlane.xlu1 %895 }
 0x127   : > { %v1543_v32 = vrot.slane %v896_v56, %v2982_v24  ;;  %v1534_v25 = vsel %vm1272_vm3, %v1533_v29, %v1529_v7  ;;  %v893_v17 = vpop.xlane.xlu0 %892 }
 0x128   : > { %v1538_v33 = vrot.slane %v893_v17, %v2998_v14 }
 0x129   : > { %1069 = vadd.xlane.f32.xlu1 %v1068_v43 }
 0x12a   : > { %v1539_v15 = vsel %vm1279_vm4, %v1538_v33, %v1534_v25  ;;  %1111 = vadd.xlane.f32.xlu0 %v1110_v50  ;;  %v902_v19 = vpop.xlane.xlu1 %901 }
 0x12b   : > { %v1553_v57 = vrot.slane %v902_v19, %v3012_v34  ;;  %v1544_v12 = vsel %vm1286_vm5, %v1543_v32, %v1539_v15  ;;  %v899_v60 = vpop.xlane.xlu0 %898 }
 0x12c   : > { %v1548_v63 = vrot.slane %v899_v60, %v3021_v41 }
 0x12d   : > { %1117 = vadd.xlane.f32.xlu1 %v1116_v8 }
 0x12e   : > { %v1549_v52 = vsel %vm1293_vm6, %v1548_v63, %v1544_v12  ;;  %1114 = vadd.xlane.f32.xlu0 %v1113_v62  ;;  %v908_v61 = vpop.xlane.xlu1 %907 }
 0x12f   : > { %v1563_v2 = vrot.slane %v908_v61, %v3024_v45  ;;  %v1554_v4 = vsel %vm1300_vm7, %v1553_v57, %v1549_v52  ;;  %v905_v28 = vpop.xlane.xlu0 %904 }
 0x130   : > { %v1558_v11 = vrot.slane %v905_v28, %v3028_v53 }
 0x132   : > { %v1559_v16 = vsel %vm1307_vm8, %v1558_v11, %v1554_v4  ;;  %v914_v18 = vpop.xlane.xlu1 %913 }
 0x133   : > { %v1573_v27 = vrot.slane %v914_v18, %v3064_v23  ;;  %v1564_v42 = vsel %vm1314_vm9, %v1563_v2, %v1559_v16  ;;  %v911_v37 = vpop.xlane.xlu0 %910 }
 0x134   : > { %v1568_v26 = vrot.slane %v911_v37, %v3069_v31 }
 0x136   : > { %v1569_v30 = vsel %vm1321_vm10, %v1568_v26, %v1564_v42  ;;  %v920_v54 = vpop.xlane.xlu1 %919 }
 0x137   : > { %v1583_v35 = vrot.slane %v920_v54, %v3083_v48  ;;  %v1574_v6 = vsel %vm1328_vm11, %v1573_v27, %v1569_v30  ;;  %v917_v36 = vpop.xlane.xlu0 %916 }
 0x138   : > { %v1578_v1 = vrot.slane %v917_v36, %v3103_v5 }
 0x13a   : > { %v1579_v13 = vsel %vm3591_vm0, %v1578_v1, %v1574_v6  ;;  %v926_v20 = vpop.xlane.xlu1 %925 }
 0x13b   : > { %v1593_v47 = vrot.slane %v926_v20, %v3107_v9  ;;  %v1584_v40 = vsel %vm1342_vm13, %v1583_v35, %v1579_v13  ;;  %v923_v58 = vpop.xlane.xlu0 %922 }
 0x13c   : > { %v1588_v29 = vrot.slane %v923_v58, %v3125_v44 }
 0x13e   : > { %v1589_v51 = vsel %vm1349_vm14, %v1588_v29, %v1584_v40  ;;  %v932_v0 = vpop.xlane.xlu1 %931 }
 0x13f   : > { %v1594_v21 = vsel %vm1356_vm15, %v1593_v47, %v1589_v51  ;;  %v1602_v46 = vrot.slane %v932_v0, %v2979_v10  ;;  %v929_v3 = vpop.xlane.xlu0 %928 }
 0x140   : > { %v1916_v7 = vsel %vm1915_vm12, %v1594_v21, %v3361_v38  ;;  %v1598_v56 = vrot.slane %v929_v3, %v2965_v22  ;;  %vm1917_vm12 = vcmask 1044484  }
 0x142   : > { %v1603_v43 = vsel %vm1258_vm1, %v1602_v46, %v1598_v56  ;;  %v938_v49 = vpop.xlane.xlu1 %937 }
 0x143   : > { %v1612_v32 = vrot.slane %v938_v49, %v2975_v59  ;;  %v935_v25 = vpop.xlane.xlu0 %934 }
 0x144   : > { %v1607_v17 = vrot.slane %v935_v25, %v2961_v55 }
 0x146   : > { %v1608_v50 = vsel %vm1265_vm2, %v1607_v17, %v1603_v43  ;;  %v944_v39 = vpop.xlane.xlu1 %943 }
 0x147   : > { %v1622_v33 = vrot.slane %v944_v39, %v2982_v24  ;;  %v1613_v15 = vsel %vm1272_vm3, %v1612_v32, %v1608_v50  ;;  %v941_v19 = vpop.xlane.xlu0 %940 }
 0x148   : > { %v1617_v38 = vrot.slane %v941_v19, %v2998_v14 }
 0x14a   : > { %v1618_v8 = vsel %vm1279_vm4, %v1617_v38, %v1613_v15  ;;  %v950_v57 = vpop.xlane.xlu1 %949 }
 0x14b   : > { %v1632_v12 = vrot.slane %v950_v57, %v3012_v34  ;;  %v1623_v60 = vsel %vm1286_vm5, %v1622_v33, %v1618_v8  ;;  %v947_v62 = vpop.xlane.xlu0 %946 }
 0x14c   : > { %v1627_v63 = vrot.slane %v947_v62, %v3021_v41 }
 0x14e   : > { %v1628_v52 = vsel %vm1293_vm6, %v1627_v63, %v1623_v60  ;;  %v956_v61 = vpop.xlane.xlu1 %955 }
 0x14f   : > { %v1642_v2 = vrot.slane %v956_v61, %v3024_v45  ;;  %v1633_v4 = vsel %vm1300_vm7, %v1632_v12, %v1628_v52  ;;  %v953_v28 = vpop.xlane.xlu0 %952 }
 0x150   : > { %v1637_v11 = vrot.slane %v953_v28, %v3028_v53 }
 0x152   : > { %v1638_v16 = vsel %vm1307_vm8, %v1637_v11, %v1633_v4  ;;  %v962_v18 = vpop.xlane.xlu1 %961 }
 0x153   : > { %v1652_v27 = vrot.slane %v962_v18, %v3064_v23  ;;  %v1643_v42 = vsel %vm1314_vm9, %v1642_v2, %v1638_v16  ;;  %v959_v37 = vpop.xlane.xlu0 %958 }
 0x154   : > { %v1647_v26 = vrot.slane %v959_v37, %v3069_v31 }
 0x156   : > { %v1648_v30 = vsel %vm1321_vm10, %v1647_v26, %v1643_v42  ;;  %v968_v54 = vpop.xlane.xlu1 %967 }
 0x157   : > { %v1662_v35 = vrot.slane %v968_v54, %v3083_v48  ;;  %v1653_v6 = vsel %vm1328_vm11, %v1652_v27, %v1648_v30  ;;  %v965_v36 = vpop.xlane.xlu0 %964 }
 0x158   : > { %v1657_v1 = vrot.slane %v965_v36, %v3103_v5 }
 0x15a   : > { %v1658_v13 = vsel %vm3591_vm0, %v1657_v1, %v1653_v6  ;;  %v974_v20 = vpop.xlane.xlu1 %973 }
 0x15b   : > { %v1672_v47 = vrot.slane %v974_v20, %v3107_v9  ;;  %v1663_v40 = vsel %vm1342_vm13, %v1662_v35, %v1658_v13  ;;  %v971_v58 = vpop.xlane.xlu0 %970 }
 0x15c   : > { %v1667_v29 = vrot.slane %v971_v58, %v3125_v44 }
 0x15e   : > { %v1668_v51 = vsel %vm1349_vm14, %v1667_v29, %v1663_v40  ;;  %v980_v0 = vpop.xlane.xlu1 %979 }
 0x15f   : > { %v1673_v21 = vsel %vm1356_vm15, %v1672_v47, %v1668_v51  ;;  %v1681_v46 = vrot.slane %v980_v0, %v2979_v10  ;;  %v977_v3 = vpop.xlane.xlu0 %976 }
 0x160   : > { %v1677_v56 = vrot.slane %v977_v3, %v2965_v22  ;;  %v3437_v43 = vsel %vm1917_vm12, %v1673_v21, %v1916_v7 }
 0x162   : > { %v1682_v49 = vsel %vm1258_vm1, %v1681_v46, %v1677_v56  ;;  %v1025_v32 = vpop.xlane.xlu1 %1024 }
 0x163   : > { %v1756_v25 = vrot.slane %v1025_v32, %v2965_v22  ;;  %v983_v17 = vpop.xlane.xlu0 %982 }
 0x164   : > { %v1686_v50 = vrot.slane %v983_v17, %v2961_v55 }
 0x166   : > { %v1687_v39 = vsel %vm1265_vm2, %v1686_v50, %v1682_v49  ;;  %v986_v33 = vpop.xlane.xlu1 %985 }
 0x167   : > { %v1691_v15 = vrot.slane %v986_v33, %v2975_v59  ;;  %v1028_v19 = vpop.xlane.xlu0 %1027 }
 0x168   : > { %v1760_v38 = vrot.slane %v1028_v19, %v2979_v10 }
 0x169   : > { %v1692_v8 = vsel %vm1272_vm3, %v1691_v15, %v1687_v39 }
 0x16a   : > { %v1761_v7 = vsel %vm1258_vm1, %v1760_v38, %v1756_v25  ;;  %v1073_v57 = vpop.xlane.xlu1 %1072 }
 0x16b   : > { %v1031_v12 = vpop.xlane.xlu0 %1030  ;;  %v1835_v60 = vrot.slane %v1073_v57, %v2965_v22 }
 0x16c   : > { %v1765_v62 = vrot.slane %v1031_v12, %v2961_v55 }
 0x16e   : > { %v1766_v63 = vsel %vm1265_vm2, %v1765_v62, %v1761_v7  ;;  %v989_v52 = vpop.xlane.xlu1 %988 }
 0x16f   : > { %v1076_v61 = vpop.xlane.xlu0 %1075  ;;  %v1696_v2 = vrot.slane %v989_v52, %v2998_v14 }
 0x170   : > { %v1839_v4 = vrot.slane %v1076_v61, %v2979_v10 }
 0x171   : > { %v1697_v28 = vsel %vm1279_vm4, %v1696_v2, %v1692_v8 }
 0x172   : > { %v1840_v11 = vsel %vm1258_vm1, %v1839_v4, %v1835_v60  ;;  %v1079_v16 = vpop.xlane.xlu1 %1078  ;;  %vm3592_vm1 = vmmov %vm3591_vm0 }
 0x173   : > { %v1034_v18 = vpop.xlane.xlu0 %1033  ;;  %v1844_v27 = vrot.slane %v1079_v16, %v2961_v55 }
 0x174   : > { %v1770_v22 = vrot.slane %v1034_v18, %v2975_v59 }
 0x175   : > { %v1845_v42 = vsel %vm1265_vm2, %v1844_v27, %v1840_v11  ;;  %vm3593_vm2 = vmmov %vm3591_vm0 }
 0x176   : > { %v1771_v37 = vsel %vm1272_vm3, %v1770_v22, %v1766_v63  ;;  %v1037_v26 = vpop.xlane.xlu1 %1036 }
 0x177   : > { %v992_v30 = vpop.xlane.xlu0 %991  ;;  %v1775_v54 = vrot.slane %v1037_v26, %v2998_v14 }
 0x178   : > { %v1701_v10 = vrot.slane %v992_v30, %v2982_v24 }
 0x179   : > { %v1776_v35 = vsel %vm1279_vm4, %v1775_v54, %v1771_v37 }
 0x17a   : > { %v1702_v6 = vsel %vm1286_vm5, %v1701_v10, %v1697_v28  ;;  %v995_v36 = vpop.xlane.xlu1 %994 }
 0x17b   : > { %v1082_v1 = vpop.xlane.xlu0 %1081  ;;  %v1706_v55 = vrot.slane %v995_v36, %v3021_v41 }
 0x17c   : > { %v1849_v13 = vrot.slane %v1082_v1, %v2975_v59 }
 0x17d   : > { %v1707_v20 = vsel %vm1293_vm6, %v1706_v55, %v1702_v6 }
 0x17e   : > { %v1850_v47 = vsel %vm1272_vm3, %v1849_v13, %v1845_v42  ;;  %v1085_v40 = vpop.xlane.xlu1 %1084  ;;  %vm3594_vm3 = vmmov %vm3591_vm0 }
 0x17f   : > { %v1040_v58 = vpop.xlane.xlu0 %1039  ;;  %v1854_v29 = vrot.slane %v1085_v40, %v2998_v14 }
 0x180   : > { %v1780_v51 = vrot.slane %v1040_v58, %v2982_v24 }
 0x181   : > { %v1855_v0 = vsel %vm1279_vm4, %v1854_v29, %v1850_v47  ;;  %vm1919_vm4 = vcmask 1045509  }
 0x182   : > { %v1781_v21 = vsel %vm1286_vm5, %v1780_v51, %v1776_v35  ;;  %v1043_v46 = vpop.xlane.xlu1 %1042 }
 0x183   : > { %v998_v3 = vpop.xlane.xlu0 %997  ;;  %v1785_v56 = vrot.slane %v1043_v46, %v3021_v41 }
 0x184   : > { %v1711_v59 = vrot.slane %v998_v3, %v3012_v34 }
 0x185   : > { %v1786_v49 = vsel %vm1293_vm6, %v1785_v56, %v1781_v21 }
 0x186   : > { %v1712_v32 = vsel %vm1300_vm7, %v1711_v59, %v1707_v20  ;;  %v1001_v25 = vpop.xlane.xlu1 %1000 }
 0x187   : > { %v1088_v17 = vpop.xlane.xlu0 %1087  ;;  %v1716_v14 = vrot.slane %v1001_v25, %v3028_v53 }
 0x188   : > { %v1859_v50 = vrot.slane %v1088_v17, %v2982_v24 }
 0x189   : > { %v1717_v39 = vsel %vm1307_vm8, %v1716_v14, %v1712_v32 }
 0x18a   : > { %v1860_v33 = vsel %vm1286_vm5, %v1859_v50, %v1855_v0  ;;  %v1091_v15 = vpop.xlane.xlu1 %1090  ;;  %vm1921_vm5 = vcmask 1046534  }
 0x18b   : > { %v1046_v19 = vpop.xlane.xlu0 %1045  ;;  %v1864_v38 = vrot.slane %v1091_v15, %v3021_v41 }
 0x18c   : > { %v1790_v8 = vrot.slane %v1046_v19, %v3012_v34 }
 0x18d   : > { %v1865_v7 = vsel %vm1293_vm6, %v1864_v38, %v1860_v33  ;;  %vm1923_vm6 = vcmask 1047559  }
 0x18e   : > { %v1791_v57 = vsel %vm1300_vm7, %v1790_v8, %v1786_v49  ;;  %v1049_v12 = vpop.xlane.xlu1 %1048 }
 0x18f   : > { %v1004_v60 = vpop.xlane.xlu0 %1003  ;;  %v1795_v62 = vrot.slane %v1049_v12, %v3028_v53 }
 0x190   : > { %v1721_v24 = vrot.slane %v1004_v60, %v3024_v45 }
 0x191   : > { %v1796_v63 = vsel %vm1307_vm8, %v1795_v62, %v1791_v57 }
 0x192   : > { %v1722_v52 = vsel %vm1314_vm9, %v1721_v24, %v1717_v39  ;;  %v1007_v61 = vpop.xlane.xlu1 %1006 }
 0x193   : > { %v1094_v2 = vpop.xlane.xlu0 %1093  ;;  %v1726_v41 = vrot.slane %v1007_v61, %v3069_v31 }
 0x194   : > { %v1869_v4 = vrot.slane %v1094_v2, %v3012_v34 }
 0x195   : > { %v1727_v28 = vsel %vm1321_vm10, %v1726_v41, %v1722_v52 }
 0x196   : > { %v1870_v11 = vsel %vm1300_vm7, %v1869_v4, %v1865_v7  ;;  %v1097_v16 = vpop.xlane.xlu1 %1096 }
 0x197   : > { %v1052_v18 = vpop.xlane.xlu0 %1051  ;;  %v1874_v27 = vrot.slane %v1097_v16, %v3028_v53 }
 0x198   : > { %v1800_v22 = vrot.slane %v1052_v18, %v3024_v45 }
 0x199   : > { %v1875_v42 = vsel %vm1307_vm8, %v1874_v27, %v1870_v11 }
 0x19a   : > { %v1801_v37 = vsel %vm1314_vm9, %v1800_v22, %v1796_v63  ;;  %v1055_v26 = vpop.xlane.xlu1 %1054 }
 0x19b   : > { %v1010_v30 = vpop.xlane.xlu0 %1009  ;;  %v1805_v54 = vrot.slane %v1055_v26, %v3069_v31 }
 0x19c   : > { %v1731_v34 = vrot.slane %v1010_v30, %v3064_v23 }
 0x19d   : > { %v1806_v10 = vsel %vm1321_vm10, %v1805_v54, %v1801_v37 }
 0x19e   : > { %v1732_v35 = vsel %vm1328_vm11, %v1731_v34, %v1727_v28  ;;  %v1013_v6 = vpop.xlane.xlu1 %1012 }
 0x19f   : > { %v1100_v36 = vpop.xlane.xlu0 %1099  ;;  %v1736_v53 = vrot.slane %v1013_v6, %v3103_v5 }
 0x1a0   : > { %v1879_v1 = vrot.slane %v1100_v36, %v3024_v45 }
 0x1a1   : > { %v1737_v55 = vsel %vm3592_vm1, %v1736_v53, %v1732_v35 }
 0x1a2   : > { %v1880_v13 = vsel %vm1314_vm9, %v1879_v1, %v1875_v42  ;;  %v1103_v20 = vpop.xlane.xlu1 %1102 }
 0x1a3   : > { %v1058_v47 = vpop.xlane.xlu0 %1057  ;;  %v1884_v40 = vrot.slane %v1103_v20, %v3069_v31 }
 0x1a4   : > { %v1810_v58 = vrot.slane %v1058_v47, %v3064_v23 }
 0x1a5   : > { %v1885_v29 = vsel %vm1321_vm10, %v1884_v40, %v1880_v13 }
 0x1a6   : > { %v1811_v51 = vsel %vm1328_vm11, %v1810_v58, %v1806_v10  ;;  %v1061_v0 = vpop.xlane.xlu1 %1060 }
 0x1a7   : > { %v1016_v21 = vpop.xlane.xlu0 %1015  ;;  %v1815_v46 = vrot.slane %v1061_v0, %v3103_v5 }
 0x1a8   : > { %v1741_v45 = vrot.slane %v1016_v21, %v3083_v48 }
 0x1a9   : > { %v1816_v3 = vsel %vm3593_vm2, %v1815_v46, %v1811_v51 }
 0x1aa   : > { %v1742_v56 = vsel %vm1342_vm13, %v1741_v45, %v1737_v55  ;;  %v1019_v59 = vpop.xlane.xlu1 %1018 }
 0x1ab   : > { %v1106_v49 = vpop.xlane.xlu0 %1105  ;;  %v1746_v31 = vrot.slane %v1019_v59, %v3125_v44 }
 0x1ac   : > { %v1889_v32 = vrot.slane %v1106_v49, %v3064_v23 }
 0x1ad   : > { %v1747_v25 = vsel %vm1349_vm14, %v1746_v31, %v1742_v56 }
 0x1ae   : > { %v1890_v17 = vsel %vm1328_vm11, %v1889_v32, %v1885_v29  ;;  %v1109_v14 = vpop.xlane.xlu1 %1108 }
 0x1af   : > { %v1064_v50 = vpop.xlane.xlu0 %1063  ;;  %v1894_v39 = vrot.slane %v1109_v14, %v3103_v5 }
 0x1b0   : > { %v1820_v33 = vrot.slane %v1064_v50, %v3083_v48 }
 0x1b1   : > { %v1895_v15 = vsel %vm3594_vm3, %v1894_v39, %v1890_v17 }
 0x1b2   : > { %v1821_v19 = vsel %vm1342_vm13, %v1820_v33, %v1816_v3  ;;  %v1067_v38 = vpop.xlane.xlu1 %1066 }
 0x1b3   : > { %v1022_v8 = vpop.xlane.xlu0 %1021  ;;  %v1825_v7 = vrot.slane %v1067_v38, %v3125_v44 }
 0x1b4   : > { %v1751_v23 = vrot.slane %v1022_v8, %v3107_v9 }
 0x1b5   : > { %v1826_v57 = vsel %vm1349_vm14, %v1825_v7, %v1821_v19 }
 0x1b6   : > { %v1752_v12 = vsel %vm1356_vm15, %v1751_v23, %v1747_v25  ;;  %v1070_v5 = vpop.xlane.xlu1 %1069 }
 0x1b7   : > { %v1920_v60 = vsel %vm1919_vm4, %v1752_v12, %v3437_v43  ;;  %v1112_v62 = vpop.xlane.xlu0 %1111  ;;  %v1830_v24 = vrot.slane %v1070_v5, %v3107_v9 }
 0x1b8   : > { %v1899_v63 = vrot.slane %v1112_v62, %v3083_v48 }
 0x1b9   : > { %v1831_v52 = vsel %vm1356_vm15, %v1830_v24, %v1826_v57 }
 0x1ba   : > { %v1900_v61 = vsel %vm1342_vm13, %v1899_v63, %v1895_v15  ;;  %v1118_v2 = vpop.xlane.xlu1 %1117  ;;  %v1922_v41 = vsel %vm1921_vm5, %v1831_v52, %v1920_v60 }
 0x1bb   : > { %v1115_v4 = vpop.xlane.xlu0 %1114  ;;  %v1909_v28 = vrot.slane %v1118_v2, %v3107_v9 }
 0x1bc   : > { %v1904_v11 = vrot.slane %v1115_v4, %v3125_v44 }
 0x1be   : > { %v1905_v43 = vsel %vm1349_vm14, %v1904_v11, %v1900_v61 }
 0x1bf   : > { %v1910_v48 = vsel %vm1356_vm15, %v1909_v28, %v1905_v43 }
 0x1c0   : > { %v1924_v9 = vsel %vm1923_vm6, %v1910_v48, %v1922_v41 }
 0x1c1   : > { %1926 = vst [vmem:[%s218_s23] sm:$0xff] %v1924_v9 }
 0x1c2   : > { %2394 = shalt.err (!%p2391_p5)
}
 0x1c3   : > { %s2395_s7 = scalar_lea.hbm %s3536_s29, 128  ;;  %s2399_s10 = scalar_lea.hbm %s3586_s3, 256 }
 0x1c4   : > { %p2396_p6 = scmp.ne.s32.totalorder %s3536_s29, %s2395_s7  ;;  %p2400_p10 = scmp.lt.u32.totalorder %s3536_s29, %s3586_s3 }
 0x1c5   : > { %p2401_p11 = scmp.lt.u32.totalorder %s2399_s10, %s2395_s7  ;;  %p2403_p13 = scmp.lt.u32.totalorder %s2395_s7, %s3536_s29 }
 0x1c6   : > { %p2397_p7 = pnand %p2396_p6, %p2523_p4 }
 0x1c7   : > { %p2402_p12 = por %p2401_p11, %p2400_p10 }
 0x1c8   : > { %p2398_p9 = pneg %p2397_p7 }
 0x1c9   : > { %p2404_p0 = por %p2403_p13, %p2402_p12 }
 0x1cb   : > { %p2405_p1 = pnand %p2404_p0, %p2398_p9 }
 0x1cd   : > { %2408 = shalt.err (!%p2405_p1)
}
 0x1ce   : > { %2051 = dma.vmem_to_hbm [thread:$0]  (%p2523_p4), %s3538_s26, 128, %s3536_s29, %s1928_s15  }
 0x1cf PF: > { %p2057_p2 = scmp.ge.s32.totalorder %s2459_s17, 2  ;;  %s1955_s19 = sand.u32 1, %s2439_s12  }
 0x1d0   : > { %s1956_s21 = scalar_lea.sflag [#allocation3], %s1955_s19 }
 0x1d1   : > { %p2054_p3 = pnand %p2057_p2, %p2530_p8 }
 0x1d3   : > { %2434 = dma.done.wait (!%p2054_p3), %s1956_s21, 128  }
 0x1d4   : > { %2436 = vsyncadd (!%p2054_p3), %s1956_s21, 4294967168  ;;  %s16_s17 = sadd.s32 1, %s2459_s17   ;;  %s3595_s12 = smov %s2443_s13 }
 0x1d5   : > { %p13_p5 = scmp.ge.s32.totalorder %s16_s17, 4   ;;  %s3596_s13 = smov %s2447_s14 }
 0x1d6   : > { %s3597_s14 = smov %s2536_s25  ;;  %s3598_s15 = smov %s2455_s16 }
 0x1d7   : > { %s3599_s16 = smov %s3601_s20  ;;  %15 = sbr.rel (!%p13_p5) target bundleno = 4 (0x4), region = 70 }
 0x1de   :  { %1961 = vsyncpa [#allocation3], 1 }
 0x1df   :  { %1963 = vsyncpa [#allocation3 + $0x1], 1 }

</bundles_post_ra>
